<compile_context>
chip_gen: v7x
topology: tpu7x:2x2x1
jax: 0.10.0
libtpu: 0.0.40
codegen_flags: <defaults>
</compile_context>

<pallas_src>
import math

import jax
import jax.numpy as jnp
import numpy as np
from jax import lax
from jax.experimental import pallas as pl
from jax.experimental.pallas import tpu as pltpu


# ----------------------------------------------------------------------------
# Pallas kernel
# ----------------------------------------------------------------------------
def _make_kernel(B, L, D, H):
    dh = D // H
    scale = 1.0 / math.sqrt(D / H)  # torch.sqrt(torch.tensor(d_model / num_head))

    def layer_norm(x, g, b):
        mu = jnp.mean(x, axis=-1, keepdims=True)
        var = jnp.mean((x - mu) ** 2, axis=-1, keepdims=True)
        return (x - mu) * lax.rsqrt(var + 1e-5) * g + b

    def kernel(enc_ref, dec_ref, mself_ref, mcross_ref,
               wq1_ref, wk1_ref, wv1_ref, wo1_ref,
               wq2_ref, wk2_ref, wv2_ref, wo2_ref,
               g1_ref, be1_ref, g2_ref, be2_ref, g3_ref, be3_ref,
               w1_ref, b1_ref, w2_ref, b2_ref,
               out_ref):
        x_enc = enc_ref[...]          # (B*L, D) — whole batch, rows = b*L + l
        x_dec = dec_ref[...]          # (B*L, D)

        def project_heads(x2, w_heads_ref):
            # x2: (B*L, D); w_heads_ref: (H, D, dh) per-head weight stack.
            # Head split is folded into the matmul (no lane slicing); heads end
            # up in the leading dim with ordering g = h*B + b -> (H*B, L, dh).
            parts = [
                jnp.dot(x2, w_heads_ref[h], preferred_element_type=jnp.float32)
                .reshape(B, L, dh)
                for h in range(H)
            ]
            return jnp.concatenate(parts, axis=0)          # leading-dim concat

        def output_proj(o, wo_heads_ref):
            # o: (H*B, L, dh); wo_heads_ref: (H, dh, D).
            # concat(heads) @ Wo^T  ==  sum_h  o_h @ Wo^T[h*dh:(h+1)*dh, :]
            # (leading-dim slices only — no lane concat).
            acc = None
            for h in range(H):
                term = jnp.dot(o[h * B:(h + 1) * B].reshape(B * L, dh),
                               wo_heads_ref[h],
                               preferred_element_type=jnp.float32)
                acc = term if acc is None else acc + term
            return acc                                       # (B*L, D)

        def mha(x_q, x_kv, wq_h, wk_h, wv_h, wo_h, mask_add):
            qh = project_heads(x_q, wq_h)                    # (H*B, L, dh)
            kh = project_heads(x_kv, wk_h)
            vh = project_heads(x_kv, wv_h)
            # Single batched score / PV matmul across all (head, batch) pairs.
            s = jnp.einsum("gqd,gkd->gqk", qh, kh,
                           preferred_element_type=jnp.float32) * scale
            s = s + mask_add                                 # precomputed mask
            s = s - jnp.max(s, axis=-1, keepdims=True)
            e = jnp.exp(s)
            # EUP vrcp: effectively free; well within the 1e-3 tolerance.
            p = e * pl.reciprocal(jnp.sum(e, axis=-1, keepdims=True), approx=True)
            o = jnp.einsum("gqk,gkd->gqd", p, vh,
                           preferred_element_type=jnp.float32)   # (H*B, L, dh)
            return output_proj(o, wo_h)

        # TODO(synk): F.dropout omitted — deterministic kernel, equivalent to eval / p_drop=0.
        # TODO(synk): at real sizes (D>=128, large d_ff/L) cast MXU feeds to bf16
        # (v6e/v7x), tile FFN over d_ff and attention flash-style over KV blocks,
        # set vmem_limit_bytes and use a core-parallel batch grid axis for v7x's
        # two TensorCores; at these toy shapes the fused single-step design wins.
        self_attn = mha(x_dec, x_dec, wq1_ref, wk1_ref, wv1_ref, wo1_ref,
                        mself_ref[...])
        t1 = layer_norm(x_dec + self_attn, g1_ref[...], be1_ref[...])

        # NOTE: the reference module uses q_raw=encoder_output and kv_raw=the
        # ORIGINAL decoder input (not t1) in the cross attention — reproduced.
        cross_attn = mha(x_enc, x_dec, wq2_ref, wk2_ref, wv2_ref, wo2_ref,
                         mcross_ref[...])
        t2 = layer_norm(t1 + cross_attn, g2_ref[...], be2_ref[...])

        h1 = jnp.maximum(
            jnp.dot(t2, w1_ref[...], preferred_element_type=jnp.float32)
            + b1_ref[...], 0.0)
        ffn = jnp.dot(h1, w2_ref[...], preferred_element_type=jnp.float32) + b2_ref[...]
        y = layer_norm(t2 + ffn, g3_ref[...], be3_ref[...])

        # Leading-dim-only reshape (layout preserving). At real model sizes
        # D>=128 this store is lane-dense automatically; flattening to (B, L*D)
        # at D=32 would just trade masked stores for an in-kernel relayout.
        out_ref[...] = y.reshape(B, L, D)

    return kernel


# ----------------------------------------------------------------------------
# Wrapper
# ----------------------------------------------------------------------------
def decoder_block_forward(enc, dec, pad_mask, params, num_head):
    B, L, D = dec.shape
    H = num_head
    dh = D // H
    kernel = _make_kernel(B, L, D, H)

    # ---- host-side precomputation (hoisted out of the kernel) --------------
    # Additive masks in head-major / batch-minor order (g = h*B + b), matching
    # the ordering produced by project_heads inside the kernel.
    pad = pad_mask.astype(jnp.float32)                           # (B, L)
    pad_add = jnp.where(pad == 0.0, -1e9, 0.0)[:, None, :]       # (B, 1, L) keys
    causal = jnp.where(
        jnp.triu(jnp.ones((L, L), jnp.float32), k=1) == 1.0, -1e9, 0.0)
    mask_self = jnp.tile(pad_add + causal[None], (H, 1, 1))      # (H*B, L, L)
    mask_cross = jnp.tile(pad_add, (H, 1, 1))                    # (H*B, 1, L)

    # Per-head weight stacks: torch Linear computes y = x @ W.T, so
    #   qkv head h uses  W.T[:, h*dh:(h+1)*dh]   -> stack (H, D, dh)
    #   out head h uses  Wo.T[h*dh:(h+1)*dh, :]  -> stack (H, dh, D)
    def qkv_heads(w):
        return jnp.transpose(w.T.reshape(D, H, dh), (1, 0, 2))   # (H, D, dh)

    def o_heads(w):
        return w.T.reshape(H, dh, D)                             # (H, dh, D)

    param_arrays = [
        qkv_heads(params["wq1"]), qkv_heads(params["wk1"]),
        qkv_heads(params["wv1"]), o_heads(params["wo1"]),
        qkv_heads(params["wq2"]), qkv_heads(params["wk2"]),
        qkv_heads(params["wv2"]), o_heads(params["wo2"]),
        params["g1"], params["be1"], params["g2"], params["be2"],
        params["g3"], params["be3"],
        params["w1"].T, params["b1"], params["w2"].T, params["b2"],
    ]

    enc2d = enc.reshape(B * L, D)
    dec2d = dec.reshape(B * L, D)

    inputs = [enc2d, dec2d, mask_self, mask_cross] + param_arrays

    def full_spec(arr):
        nd = arr.ndim
        return pl.BlockSpec(arr.shape, lambda i, _nd=nd: (0,) * _nd)

    in_specs = [full_spec(a) for a in inputs]

    # One grid step for the whole (tiny) batch: no per-step grid overhead,
    # better sublane occupancy of every vector op.
    return pl.pallas_call(
        kernel,
        out_shape=jax.ShapeDtypeStruct((B, L, D), jnp.float32),
        grid_spec=pltpu.PrefetchScalarGridSpec(
            num_scalar_prefetch=0,
            grid=(1,),
            in_specs=in_specs,
            out_specs=pl.BlockSpec((B, L, D), lambda i: (0, 0, 0))),
        compiler_params=pltpu.CompilerParams(
            dimension_semantics=("arbitrary",)),
    )(*inputs)


# ----------------------------------------------------------------------------
# Pure-JAX reference (mirrors the PyTorch module's math) for validation
# ----------------------------------------------------------------------------
def _mha_ref(x_q, x_kv, wq, wk, wv, wo, pad_mask, H, causal):
    B, L, D = x_q.shape
    dh = D // H
    q, k, v = x_q @ wq.T, x_kv @ wk.T, x_kv @ wv.T

    def split(t):
        return t.reshape(B, L, H, dh).transpose(0, 2, 1, 3).reshape(B * H, L, dh)

    qh, kh, vh = split(q), split(k), split(v)
    s = jnp.einsum("bld,bmd->blm", qh, kh) / math.sqrt(D / H)
    pm = jnp.repeat(pad_mask, H, axis=0)[:, None, :]
    s = jnp.where(pm == 0, -1e9, s)
    if causal:
        tri = (jnp.triu(jnp.ones((L, L)), k=1) == 1)[None]
        s = jnp.where(tri, -1e9, s)
    w = jax.nn.softmax(s, axis=-1)
    o = jnp.einsum("blm,bmd->bld", w, vh)
    o = o.reshape(B, H, L, dh).transpose(0, 2, 1, 3).reshape(B, L, D)
    return o @ wo.T


def _ln_ref(x, g, b):
    mu = jnp.mean(x, axis=-1, keepdims=True)
    var = jnp.mean((x - mu) ** 2, axis=-1, keepdims=True)
    return (x - mu) / jnp.sqrt(var + 1e-5) * g + b


def reference_forward(enc, dec, pad_mask, p, H):
    t1 = _ln_ref(dec + _mha_ref(dec, dec, p["wq1"], p["wk1"], p["wv1"], p["wo1"],
                                pad_mask, H, True), p["g1"], p["be1"])
    t2 = _ln_ref(t1 + _mha_ref(enc, dec, p["wq2"], p["wk2"], p["wv2"], p["wo2"],
                               pad_mask, H, False), p["g2"], p["be2"])
    ffn = jnp.maximum(t2 @ p["w1"].T + p["b1"], 0.0) @ p["w2"].T + p["b2"]
    return _ln_ref(t2 + ffn, p["g3"], p["be3"])


# ----------------------------------------------------------------------------
# Main
# ----------------------------------------------------------------------------
if __name__ == "__main__":
    B, L, D, H, D_FF = 2, 8, 32, 4, 64

    key = jax.random.PRNGKey(0)
    ks = jax.random.split(key, 16)

    def lin(k, out_d, in_d):
        return jax.random.normal(k, (out_d, in_d), jnp.float32) * 0.05

    params = {
        "wq1": lin(ks[0], D, D), "wk1": lin(ks[1], D, D),
        "wv1": lin(ks[2], D, D), "wo1": lin(ks[3], D, D),
        "wq2": lin(ks[4], D, D), "wk2": lin(ks[5], D, D),
        "wv2": lin(ks[6], D, D), "wo2": lin(ks[7], D, D),
        "g1": jnp.ones((1, D), jnp.float32), "be1": jnp.zeros((1, D), jnp.float32),
        "g2": jnp.ones((1, D), jnp.float32), "be2": jnp.zeros((1, D), jnp.float32),
        "g3": jnp.ones((1, D), jnp.float32), "be3": jnp.zeros((1, D), jnp.float32),
        "w1": lin(ks[8], D_FF, D), "b1": lin(ks[9], 1, D_FF),
        "w2": lin(ks[10], D, D_FF), "b2": lin(ks[11], 1, D),
    }

    enc = jax.random.normal(ks[12], (B, L, D), jnp.float32)
    dec = jax.random.normal(ks[13], (B, L, D), jnp.float32)
    pad_mask = jnp.array([[1, 1, 1, 1, 1, 1, 0, 0],
                          [1, 1, 1, 1, 0, 0, 0, 0]], dtype=jnp.float32)

    out = decoder_block_forward(enc, dec, pad_mask, params, H)
    out = jax.block_until_ready(out)

    ref = jax.block_until_ready(reference_forward(enc, dec, pad_mask, params, H))
    np.testing.assert_allclose(np.asarray(out), np.asarray(ref), rtol=1e-3, atol=1e-3)

    print("KERNEL_OK")
</pallas_src>

<mosaic_0001>
module attributes {stable_mosaic.version = 11 : i64} {
  func.func @kernel(%arg0: i32, %arg1: memref<16x32xf32, #tpu.memory_space<vmem>>, %arg2: memref<16x32xf32, #tpu.memory_space<vmem>>, %arg3: memref<8x8x8xf32, #tpu.memory_space<vmem>>, %arg4: memref<8x1x8xf32, #tpu.memory_space<vmem>>, %arg5: memref<4x32x8xf32, #tpu.memory_space<vmem>>, %arg6: memref<4x32x8xf32, #tpu.memory_space<vmem>>, %arg7: memref<4x32x8xf32, #tpu.memory_space<vmem>>, %arg8: memref<4x8x32xf32, #tpu.memory_space<vmem>>, %arg9: memref<4x32x8xf32, #tpu.memory_space<vmem>>, %arg10: memref<4x32x8xf32, #tpu.memory_space<vmem>>, %arg11: memref<4x32x8xf32, #tpu.memory_space<vmem>>, %arg12: memref<4x8x32xf32, #tpu.memory_space<vmem>>, %arg13: memref<1x32xf32, #tpu.memory_space<vmem>>, %arg14: memref<1x32xf32, #tpu.memory_space<vmem>>, %arg15: memref<1x32xf32, #tpu.memory_space<vmem>>, %arg16: memref<1x32xf32, #tpu.memory_space<vmem>>, %arg17: memref<1x32xf32, #tpu.memory_space<vmem>>, %arg18: memref<1x32xf32, #tpu.memory_space<vmem>>, %arg19: memref<32x64xf32, #tpu.memory_space<vmem>>, %arg20: memref<1x64xf32, #tpu.memory_space<vmem>>, %arg21: memref<64x32xf32, #tpu.memory_space<vmem>>, %arg22: memref<1x32xf32, #tpu.memory_space<vmem>>, %arg23: memref<2x8x32xf32, #tpu.memory_space<vmem>>) attributes {dimension_semantics = [#tpu.dimension_semantics<arbitrary>], iteration_bounds = array<i64: 1>, scalar_prefetch = 0 : i64, scratch_operands = 0 : i64, tpu.core_type = #tpu.core_type<tc>, window_params = [{pipeline_mode = #tpu.pipeline_mode<synchronous>, transform_indices = @transform_0, window_bounds = array<i64: 16, 32>}, {pipeline_mode = #tpu.pipeline_mode<synchronous>, transform_indices = @transform_1, window_bounds = array<i64: 16, 32>}, {pipeline_mode = #tpu.pipeline_mode<synchronous>, transform_indices = @transform_2, window_bounds = array<i64: 8, 8, 8>}, {pipeline_mode = #tpu.pipeline_mode<synchronous>, transform_indices = @transform_3, window_bounds = array<i64: 8, 1, 8>}, {pipeline_mode = #tpu.pipeline_mode<synchronous>, transform_indices = @transform_4, window_bounds = array<i64: 4, 32, 8>}, {pipeline_mode = #tpu.pipeline_mode<synchronous>, transform_indices = @transform_5, window_bounds = array<i64: 4, 32, 8>}, {pipeline_mode = #tpu.pipeline_mode<synchronous>, transform_indices = @transform_6, window_bounds = array<i64: 4, 32, 8>}, {pipeline_mode = #tpu.pipeline_mode<synchronous>, transform_indices = @transform_7, window_bounds = array<i64: 4, 8, 32>}, {pipeline_mode = #tpu.pipeline_mode<synchronous>, transform_indices = @transform_8, window_bounds = array<i64: 4, 32, 8>}, {pipeline_mode = #tpu.pipeline_mode<synchronous>, transform_indices = @transform_9, window_bounds = array<i64: 4, 32, 8>}, {pipeline_mode = #tpu.pipeline_mode<synchronous>, transform_indices = @transform_10, window_bounds = array<i64: 4, 32, 8>}, {pipeline_mode = #tpu.pipeline_mode<synchronous>, transform_indices = @transform_11, window_bounds = array<i64: 4, 8, 32>}, {pipeline_mode = #tpu.pipeline_mode<synchronous>, transform_indices = @transform_12, window_bounds = array<i64: 1, 32>}, {pipeline_mode = #tpu.pipeline_mode<synchronous>, transform_indices = @transform_13, window_bounds = array<i64: 1, 32>}, {pipeline_mode = #tpu.pipeline_mode<synchronous>, transform_indices = @transform_14, window_bounds = array<i64: 1, 32>}, {pipeline_mode = #tpu.pipeline_mode<synchronous>, transform_indices = @transform_15, window_bounds = array<i64: 1, 32>}, {pipeline_mode = #tpu.pipeline_mode<synchronous>, transform_indices = @transform_16, window_bounds = array<i64: 1, 32>}, {pipeline_mode = #tpu.pipeline_mode<synchronous>, transform_indices = @transform_17, window_bounds = array<i64: 1, 32>}, {pipeline_mode = #tpu.pipeline_mode<synchronous>, transform_indices = @transform_18, window_bounds = array<i64: 32, 64>}, {pipeline_mode = #tpu.pipeline_mode<synchronous>, transform_indices = @transform_19, window_bounds = array<i64: 1, 64>}, {pipeline_mode = #tpu.pipeline_mode<synchronous>, transform_indices = @transform_20, window_bounds = array<i64: 64, 32>}, {pipeline_mode = #tpu.pipeline_mode<synchronous>, transform_indices = @transform_21, window_bounds = array<i64: 1, 32>}, {pipeline_mode = #tpu.pipeline_mode<synchronous>, transform_indices = @transform_22, window_bounds = array<i64: 2, 8, 32>}]} {
    %c0 = arith.constant 0 : index
    %c0_0 = arith.constant 0 : index
    %0 = vector.load %arg1[%c0, %c0_0] : memref<16x32xf32, #tpu.memory_space<vmem>>, vector<16x32xf32>
    %c0_1 = arith.constant 0 : index
    %c0_2 = arith.constant 0 : index
    %1 = vector.load %arg2[%c0_1, %c0_2] : memref<16x32xf32, #tpu.memory_space<vmem>>, vector<16x32xf32>
    %c0_3 = arith.constant 0 : index
    %c0_4 = arith.constant 0 : index
    %c0_5 = arith.constant 0 : index
    %2 = vector.load %arg3[%c0_3, %c0_4, %c0_5] : memref<8x8x8xf32, #tpu.memory_space<vmem>>, vector<8x8x8xf32>
    %c0_6 = arith.constant 0 : index
    %c0_7 = arith.constant 0 : index
    %c0_8 = arith.constant 0 : index
    %3 = vector.load %arg5[%c0_6, %c0_7, %c0_8] : memref<4x32x8xf32, #tpu.memory_space<vmem>>, vector<1x32x8xf32>
    %4 = vector.shape_cast %3 : vector<1x32x8xf32> to vector<32x8xf32>
    %cst = arith.constant dense<0.000000e+00> : vector<16x8xf32>
    %5 = tpu.matmul %1, %4, %cst {dimension_numbers = #tpu.dot_dimension_numbers<[1], [0], [0], [1], [0, 0, 1, 1], [], []>} : vector<16x32xf32>, vector<32x8xf32>, vector<16x8xf32> -> vector<16x8xf32>
    %6 = vector.shape_cast %5 : vector<16x8xf32> to vector<2x8x8xf32>
    %c1 = arith.constant 1 : index
    %c0_9 = arith.constant 0 : index
    %c0_10 = arith.constant 0 : index
    %7 = vector.load %arg5[%c1, %c0_9, %c0_10] : memref<4x32x8xf32, #tpu.memory_space<vmem>>, vector<1x32x8xf32>
    %8 = vector.shape_cast %7 : vector<1x32x8xf32> to vector<32x8xf32>
    %cst_11 = arith.constant dense<0.000000e+00> : vector<16x8xf32>
    %9 = tpu.matmul %1, %8, %cst_11 {dimension_numbers = #tpu.dot_dimension_numbers<[1], [0], [0], [1], [0, 0, 1, 1], [], []>} : vector<16x32xf32>, vector<32x8xf32>, vector<16x8xf32> -> vector<16x8xf32>
    %10 = vector.shape_cast %9 : vector<16x8xf32> to vector<2x8x8xf32>
    %c2 = arith.constant 2 : index
    %c0_12 = arith.constant 0 : index
    %c0_13 = arith.constant 0 : index
    %11 = vector.load %arg5[%c2, %c0_12, %c0_13] : memref<4x32x8xf32, #tpu.memory_space<vmem>>, vector<1x32x8xf32>
    %12 = vector.shape_cast %11 : vector<1x32x8xf32> to vector<32x8xf32>
    %cst_14 = arith.constant dense<0.000000e+00> : vector<16x8xf32>
    %13 = tpu.matmul %1, %12, %cst_14 {dimension_numbers = #tpu.dot_dimension_numbers<[1], [0], [0], [1], [0, 0, 1, 1], [], []>} : vector<16x32xf32>, vector<32x8xf32>, vector<16x8xf32> -> vector<16x8xf32>
    %14 = vector.shape_cast %13 : vector<16x8xf32> to vector<2x8x8xf32>
    %c3 = arith.constant 3 : index
    %c0_15 = arith.constant 0 : index
    %c0_16 = arith.constant 0 : index
    %15 = vector.load %arg5[%c3, %c0_15, %c0_16] : memref<4x32x8xf32, #tpu.memory_space<vmem>>, vector<1x32x8xf32>
    %16 = vector.shape_cast %15 : vector<1x32x8xf32> to vector<32x8xf32>
    %cst_17 = arith.constant dense<0.000000e+00> : vector<16x8xf32>
    %17 = tpu.matmul %1, %16, %cst_17 {dimension_numbers = #tpu.dot_dimension_numbers<[1], [0], [0], [1], [0, 0, 1, 1], [], []>} : vector<16x32xf32>, vector<32x8xf32>, vector<16x8xf32> -> vector<16x8xf32>
    %18 = vector.shape_cast %17 : vector<16x8xf32> to vector<2x8x8xf32>
    %19 = tpu.concatenate %6, %10, %14, %18 in 0 : vector<2x8x8xf32>, vector<2x8x8xf32>, vector<2x8x8xf32>, vector<2x8x8xf32> -> vector<8x8x8xf32>
    %c0_18 = arith.constant 0 : index
    %c0_19 = arith.constant 0 : index
    %c0_20 = arith.constant 0 : index
    %20 = vector.load %arg6[%c0_18, %c0_19, %c0_20] : memref<4x32x8xf32, #tpu.memory_space<vmem>>, vector<1x32x8xf32>
    %21 = vector.shape_cast %20 : vector<1x32x8xf32> to vector<32x8xf32>
    %cst_21 = arith.constant dense<0.000000e+00> : vector<16x8xf32>
    %22 = tpu.matmul %1, %21, %cst_21 {dimension_numbers = #tpu.dot_dimension_numbers<[1], [0], [0], [1], [0, 0, 1, 1], [], []>} : vector<16x32xf32>, vector<32x8xf32>, vector<16x8xf32> -> vector<16x8xf32>
    %23 = vector.shape_cast %22 : vector<16x8xf32> to vector<2x8x8xf32>
    %c1_22 = arith.constant 1 : index
    %c0_23 = arith.constant 0 : index
    %c0_24 = arith.constant 0 : index
    %24 = vector.load %arg6[%c1_22, %c0_23, %c0_24] : memref<4x32x8xf32, #tpu.memory_space<vmem>>, vector<1x32x8xf32>
    %25 = vector.shape_cast %24 : vector<1x32x8xf32> to vector<32x8xf32>
    %cst_25 = arith.constant dense<0.000000e+00> : vector<16x8xf32>
    %26 = tpu.matmul %1, %25, %cst_25 {dimension_numbers = #tpu.dot_dimension_numbers<[1], [0], [0], [1], [0, 0, 1, 1], [], []>} : vector<16x32xf32>, vector<32x8xf32>, vector<16x8xf32> -> vector<16x8xf32>
    %27 = vector.shape_cast %26 : vector<16x8xf32> to vector<2x8x8xf32>
    %c2_26 = arith.constant 2 : index
    %c0_27 = arith.constant 0 : index
    %c0_28 = arith.constant 0 : index
    %28 = vector.load %arg6[%c2_26, %c0_27, %c0_28] : memref<4x32x8xf32, #tpu.memory_space<vmem>>, vector<1x32x8xf32>
    %29 = vector.shape_cast %28 : vector<1x32x8xf32> to vector<32x8xf32>
    %cst_29 = arith.constant dense<0.000000e+00> : vector<16x8xf32>
    %30 = tpu.matmul %1, %29, %cst_29 {dimension_numbers = #tpu.dot_dimension_numbers<[1], [0], [0], [1], [0, 0, 1, 1], [], []>} : vector<16x32xf32>, vector<32x8xf32>, vector<16x8xf32> -> vector<16x8xf32>
    %31 = vector.shape_cast %30 : vector<16x8xf32> to vector<2x8x8xf32>
    %c3_30 = arith.constant 3 : index
    %c0_31 = arith.constant 0 : index
    %c0_32 = arith.constant 0 : index
    %32 = vector.load %arg6[%c3_30, %c0_31, %c0_32] : memref<4x32x8xf32, #tpu.memory_space<vmem>>, vector<1x32x8xf32>
    %33 = vector.shape_cast %32 : vector<1x32x8xf32> to vector<32x8xf32>
    %cst_33 = arith.constant dense<0.000000e+00> : vector<16x8xf32>
    %34 = tpu.matmul %1, %33, %cst_33 {dimension_numbers = #tpu.dot_dimension_numbers<[1], [0], [0], [1], [0, 0, 1, 1], [], []>} : vector<16x32xf32>, vector<32x8xf32>, vector<16x8xf32> -> vector<16x8xf32>
    %35 = vector.shape_cast %34 : vector<16x8xf32> to vector<2x8x8xf32>
    %36 = tpu.concatenate %23, %27, %31, %35 in 0 : vector<2x8x8xf32>, vector<2x8x8xf32>, vector<2x8x8xf32>, vector<2x8x8xf32> -> vector<8x8x8xf32>
    %c0_34 = arith.constant 0 : index
    %c0_35 = arith.constant 0 : index
    %c0_36 = arith.constant 0 : index
    %37 = vector.load %arg7[%c0_34, %c0_35, %c0_36] : memref<4x32x8xf32, #tpu.memory_space<vmem>>, vector<1x32x8xf32>
    %38 = vector.shape_cast %37 : vector<1x32x8xf32> to vector<32x8xf32>
    %cst_37 = arith.constant dense<0.000000e+00> : vector<16x8xf32>
    %39 = tpu.matmul %1, %38, %cst_37 {dimension_numbers = #tpu.dot_dimension_numbers<[1], [0], [0], [1], [0, 0, 1, 1], [], []>} : vector<16x32xf32>, vector<32x8xf32>, vector<16x8xf32> -> vector<16x8xf32>
    %40 = vector.shape_cast %39 : vector<16x8xf32> to vector<2x8x8xf32>
    %c1_38 = arith.constant 1 : index
    %c0_39 = arith.constant 0 : index
    %c0_40 = arith.constant 0 : index
    %41 = vector.load %arg7[%c1_38, %c0_39, %c0_40] : memref<4x32x8xf32, #tpu.memory_space<vmem>>, vector<1x32x8xf32>
    %42 = vector.shape_cast %41 : vector<1x32x8xf32> to vector<32x8xf32>
    %cst_41 = arith.constant dense<0.000000e+00> : vector<16x8xf32>
    %43 = tpu.matmul %1, %42, %cst_41 {dimension_numbers = #tpu.dot_dimension_numbers<[1], [0], [0], [1], [0, 0, 1, 1], [], []>} : vector<16x32xf32>, vector<32x8xf32>, vector<16x8xf32> -> vector<16x8xf32>
    %44 = vector.shape_cast %43 : vector<16x8xf32> to vector<2x8x8xf32>
    %c2_42 = arith.constant 2 : index
    %c0_43 = arith.constant 0 : index
    %c0_44 = arith.constant 0 : index
    %45 = vector.load %arg7[%c2_42, %c0_43, %c0_44] : memref<4x32x8xf32, #tpu.memory_space<vmem>>, vector<1x32x8xf32>
    %46 = vector.shape_cast %45 : vector<1x32x8xf32> to vector<32x8xf32>
    %cst_45 = arith.constant dense<0.000000e+00> : vector<16x8xf32>
    %47 = tpu.matmul %1, %46, %cst_45 {dimension_numbers = #tpu.dot_dimension_numbers<[1], [0], [0], [1], [0, 0, 1, 1], [], []>} : vector<16x32xf32>, vector<32x8xf32>, vector<16x8xf32> -> vector<16x8xf32>
    %48 = vector.shape_cast %47 : vector<16x8xf32> to vector<2x8x8xf32>
    %c3_46 = arith.constant 3 : index
    %c0_47 = arith.constant 0 : index
    %c0_48 = arith.constant 0 : index
    %49 = vector.load %arg7[%c3_46, %c0_47, %c0_48] : memref<4x32x8xf32, #tpu.memory_space<vmem>>, vector<1x32x8xf32>
    %50 = vector.shape_cast %49 : vector<1x32x8xf32> to vector<32x8xf32>
    %cst_49 = arith.constant dense<0.000000e+00> : vector<16x8xf32>
    %51 = tpu.matmul %1, %50, %cst_49 {dimension_numbers = #tpu.dot_dimension_numbers<[1], [0], [0], [1], [0, 0, 1, 1], [], []>} : vector<16x32xf32>, vector<32x8xf32>, vector<16x8xf32> -> vector<16x8xf32>
    %52 = vector.shape_cast %51 : vector<16x8xf32> to vector<2x8x8xf32>
    %53 = tpu.concatenate %40, %44, %48, %52 in 0 : vector<2x8x8xf32>, vector<2x8x8xf32>, vector<2x8x8xf32>, vector<2x8x8xf32> -> vector<8x8x8xf32>
    "tpu.trace_start"() <{level = 10 : i32, message = "gqd,gkd->gqk"}> : () -> ()
    %cst_50 = arith.constant dense<0.000000e+00> : vector<8x8x8xf32>
    %54 = tpu.matmul %19, %36, %cst_50 {dimension_numbers = #tpu.dot_dimension_numbers<[2], [2], [1], [1], [0, 0, 0, 1, 1, 1], [0], [0]>} : vector<8x8x8xf32>, vector<8x8x8xf32>, vector<8x8x8xf32> -> vector<8x8x8xf32>
    "tpu.trace_stop"() : () -> ()
    %cst_51 = arith.constant 0.353553385 : f32
    %55 = vector.broadcast %cst_51 : f32 to vector<8x8x8xf32>
    %56 = arith.mulf %54, %55 : vector<8x8x8xf32>
    %57 = arith.addf %56, %2 : vector<8x8x8xf32>
    %cst_52 = arith.constant dense<0xFF800000> : vector<8x8xf32>
    %58 = vector.multi_reduction <maximumf>, %57, %cst_52 [2] : vector<8x8x8xf32> to vector<8x8xf32>
    %59 = vector.shape_cast %58 : vector<8x8xf32> to vector<8x8x1xf32>
    %60 = vector.broadcast %59 : vector<8x8x1xf32> to vector<8x8x8xf32>
    %61 = arith.subf %57, %60 : vector<8x8x8xf32>
    %62 = math.exp %61 : vector<8x8x8xf32>
    %cst_53 = arith.constant dense<0.000000e+00> : vector<8x8xf32>
    %63 = vector.multi_reduction <add>, %62, %cst_53 [2] : vector<8x8x8xf32> to vector<8x8xf32>
    %64 = vector.shape_cast %63 : vector<8x8xf32> to vector<8x8x1xf32>
    %65 = tpu.reciprocal %64 {approx = true} : vector<8x8x1xf32> -> vector<8x8x1xf32>
    %66 = vector.broadcast %65 : vector<8x8x1xf32> to vector<8x8x8xf32>
    %67 = arith.mulf %62, %66 : vector<8x8x8xf32>
    "tpu.trace_start"() <{level = 10 : i32, message = "gqk,gkd->gqd"}> : () -> ()
    %cst_54 = arith.constant dense<0.000000e+00> : vector<8x8x8xf32>
    %68 = tpu.matmul %67, %53, %cst_54 {dimension_numbers = #tpu.dot_dimension_numbers<[2], [1], [1], [2], [0, 0, 0, 1, 1, 2], [0], [0]>} : vector<8x8x8xf32>, vector<8x8x8xf32>, vector<8x8x8xf32> -> vector<8x8x8xf32>
    "tpu.trace_stop"() : () -> ()
    %69 = vector.extract_strided_slice %68 {offsets = [0, 0, 0], sizes = [2, 8, 8], strides = [1, 1, 1]} : vector<8x8x8xf32> to vector<2x8x8xf32>
    %70 = vector.shape_cast %69 : vector<2x8x8xf32> to vector<16x8xf32>
    %c0_55 = arith.constant 0 : index
    %c0_56 = arith.constant 0 : index
    %c0_57 = arith.constant 0 : index
    %71 = vector.load %arg8[%c0_55, %c0_56, %c0_57] : memref<4x8x32xf32, #tpu.memory_space<vmem>>, vector<1x8x32xf32>
    %72 = vector.shape_cast %71 : vector<1x8x32xf32> to vector<8x32xf32>
    %cst_58 = arith.constant dense<0.000000e+00> : vector<16x32xf32>
    %73 = tpu.matmul %70, %72, %cst_58 {dimension_numbers = #tpu.dot_dimension_numbers<[1], [0], [0], [1], [0, 0, 1, 1], [], []>} : vector<16x8xf32>, vector<8x32xf32>, vector<16x32xf32> -> vector<16x32xf32>
    %74 = vector.extract_strided_slice %68 {offsets = [2, 0, 0], sizes = [2, 8, 8], strides = [1, 1, 1]} : vector<8x8x8xf32> to vector<2x8x8xf32>
    %75 = vector.shape_cast %74 : vector<2x8x8xf32> to vector<16x8xf32>
    %c1_59 = arith.constant 1 : index
    %c0_60 = arith.constant 0 : index
    %c0_61 = arith.constant 0 : index
    %76 = vector.load %arg8[%c1_59, %c0_60, %c0_61] : memref<4x8x32xf32, #tpu.memory_space<vmem>>, vector<1x8x32xf32>
    %77 = vector.shape_cast %76 : vector<1x8x32xf32> to vector<8x32xf32>
    %cst_62 = arith.constant dense<0.000000e+00> : vector<16x32xf32>
    %78 = tpu.matmul %75, %77, %cst_62 {dimension_numbers = #tpu.dot_dimension_numbers<[1], [0], [0], [1], [0, 0, 1, 1], [], []>} : vector<16x8xf32>, vector<8x32xf32>, vector<16x32xf32> -> vector<16x32xf32>
    %79 = arith.addf %73, %78 : vector<16x32xf32>
    %80 = vector.extract_strided_slice %68 {offsets = [4, 0, 0], sizes = [2, 8, 8], strides = [1, 1, 1]} : vector<8x8x8xf32> to vector<2x8x8xf32>
    %81 = vector.shape_cast %80 : vector<2x8x8xf32> to vector<16x8xf32>
    %c2_63 = arith.constant 2 : index
    %c0_64 = arith.constant 0 : index
    %c0_65 = arith.constant 0 : index
    %82 = vector.load %arg8[%c2_63, %c0_64, %c0_65] : memref<4x8x32xf32, #tpu.memory_space<vmem>>, vector<1x8x32xf32>
    %83 = vector.shape_cast %82 : vector<1x8x32xf32> to vector<8x32xf32>
    %cst_66 = arith.constant dense<0.000000e+00> : vector<16x32xf32>
    %84 = tpu.matmul %81, %83, %cst_66 {dimension_numbers = #tpu.dot_dimension_numbers<[1], [0], [0], [1], [0, 0, 1, 1], [], []>} : vector<16x8xf32>, vector<8x32xf32>, vector<16x32xf32> -> vector<16x32xf32>
    %85 = arith.addf %79, %84 : vector<16x32xf32>
    %86 = vector.extract_strided_slice %68 {offsets = [6, 0, 0], sizes = [2, 8, 8], strides = [1, 1, 1]} : vector<8x8x8xf32> to vector<2x8x8xf32>
    %87 = vector.shape_cast %86 : vector<2x8x8xf32> to vector<16x8xf32>
    %c3_67 = arith.constant 3 : index
    %c0_68 = arith.constant 0 : index
    %c0_69 = arith.constant 0 : index
    %88 = vector.load %arg8[%c3_67, %c0_68, %c0_69] : memref<4x8x32xf32, #tpu.memory_space<vmem>>, vector<1x8x32xf32>
    %89 = vector.shape_cast %88 : vector<1x8x32xf32> to vector<8x32xf32>
    %cst_70 = arith.constant dense<0.000000e+00> : vector<16x32xf32>
    %90 = tpu.matmul %87, %89, %cst_70 {dimension_numbers = #tpu.dot_dimension_numbers<[1], [0], [0], [1], [0, 0, 1, 1], [], []>} : vector<16x8xf32>, vector<8x32xf32>, vector<16x32xf32> -> vector<16x32xf32>
    %91 = arith.addf %85, %90 : vector<16x32xf32>
    %92 = arith.addf %1, %91 : vector<16x32xf32>
    %c0_71 = arith.constant 0 : index
    %c0_72 = arith.constant 0 : index
    %93 = vector.load %arg13[%c0_71, %c0_72] : memref<1x32xf32, #tpu.memory_space<vmem>>, vector<1x32xf32>
    %c0_73 = arith.constant 0 : index
    %c0_74 = arith.constant 0 : index
    %94 = vector.load %arg14[%c0_73, %c0_74] : memref<1x32xf32, #tpu.memory_space<vmem>>, vector<1x32xf32>
    %cst_75 = arith.constant dense<0.000000e+00> : vector<16xf32>
    %95 = vector.multi_reduction <add>, %92, %cst_75 [1] : vector<16x32xf32> to vector<16xf32>
    %96 = vector.shape_cast %95 : vector<16xf32> to vector<16x1xf32>
    %cst_76 = arith.constant 3.200000e+01 : f32
    %97 = vector.broadcast %cst_76 : f32 to vector<16x1xf32>
    %98 = arith.divf %96, %97 : vector<16x1xf32>
    %99 = vector.broadcast %98 : vector<16x1xf32> to vector<16x32xf32>
    %100 = arith.subf %92, %99 : vector<16x32xf32>
    %101 = arith.mulf %100, %100 : vector<16x32xf32>
    %cst_77 = arith.constant dense<0.000000e+00> : vector<16xf32>
    %102 = vector.multi_reduction <add>, %101, %cst_77 [1] : vector<16x32xf32> to vector<16xf32>
    %103 = vector.shape_cast %102 : vector<16xf32> to vector<16x1xf32>
    %cst_78 = arith.constant 3.200000e+01 : f32
    %104 = vector.broadcast %cst_78 : f32 to vector<16x1xf32>
    %105 = arith.divf %103, %104 : vector<16x1xf32>
    %106 = vector.broadcast %98 : vector<16x1xf32> to vector<16x32xf32>
    %107 = arith.subf %92, %106 : vector<16x32xf32>
    %cst_79 = arith.constant 9.99999974E-6 : f32
    %108 = vector.broadcast %cst_79 : f32 to vector<16x1xf32>
    %109 = arith.addf %105, %108 : vector<16x1xf32>
    %110 = math.rsqrt %109 : vector<16x1xf32>
    %111 = vector.broadcast %110 : vector<16x1xf32> to vector<16x32xf32>
    %112 = arith.mulf %107, %111 : vector<16x32xf32>
    %113 = vector.broadcast %93 : vector<1x32xf32> to vector<16x32xf32>
    %114 = arith.mulf %112, %113 : vector<16x32xf32>
    %115 = vector.broadcast %94 : vector<1x32xf32> to vector<16x32xf32>
    %116 = arith.addf %114, %115 : vector<16x32xf32>
    %c0_80 = arith.constant 0 : index
    %c0_81 = arith.constant 0 : index
    %c0_82 = arith.constant 0 : index
    %117 = vector.load %arg4[%c0_80, %c0_81, %c0_82] : memref<8x1x8xf32, #tpu.memory_space<vmem>>, vector<8x1x8xf32>
    %c0_83 = arith.constant 0 : index
    %c0_84 = arith.constant 0 : index
    %c0_85 = arith.constant 0 : index
    %118 = vector.load %arg9[%c0_83, %c0_84, %c0_85] : memref<4x32x8xf32, #tpu.memory_space<vmem>>, vector<1x32x8xf32>
    %119 = vector.shape_cast %118 : vector<1x32x8xf32> to vector<32x8xf32>
    %cst_86 = arith.constant dense<0.000000e+00> : vector<16x8xf32>
    %120 = tpu.matmul %0, %119, %cst_86 {dimension_numbers = #tpu.dot_dimension_numbers<[1], [0], [0], [1], [0, 0, 1, 1], [], []>} : vector<16x32xf32>, vector<32x8xf32>, vector<16x8xf32> -> vector<16x8xf32>
    %121 = vector.shape_cast %120 : vector<16x8xf32> to vector<2x8x8xf32>
    %c1_87 = arith.constant 1 : index
    %c0_88 = arith.constant 0 : index
    %c0_89 = arith.constant 0 : index
    %122 = vector.load %arg9[%c1_87, %c0_88, %c0_89] : memref<4x32x8xf32, #tpu.memory_space<vmem>>, vector<1x32x8xf32>
    %123 = vector.shape_cast %122 : vector<1x32x8xf32> to vector<32x8xf32>
    %cst_90 = arith.constant dense<0.000000e+00> : vector<16x8xf32>
    %124 = tpu.matmul %0, %123, %cst_90 {dimension_numbers = #tpu.dot_dimension_numbers<[1], [0], [0], [1], [0, 0, 1, 1], [], []>} : vector<16x32xf32>, vector<32x8xf32>, vector<16x8xf32> -> vector<16x8xf32>
    %125 = vector.shape_cast %124 : vector<16x8xf32> to vector<2x8x8xf32>
    %c2_91 = arith.constant 2 : index
    %c0_92 = arith.constant 0 : index
    %c0_93 = arith.constant 0 : index
    %126 = vector.load %arg9[%c2_91, %c0_92, %c0_93] : memref<4x32x8xf32, #tpu.memory_space<vmem>>, vector<1x32x8xf32>
    %127 = vector.shape_cast %126 : vector<1x32x8xf32> to vector<32x8xf32>
    %cst_94 = arith.constant dense<0.000000e+00> : vector<16x8xf32>
    %128 = tpu.matmul %0, %127, %cst_94 {dimension_numbers = #tpu.dot_dimension_numbers<[1], [0], [0], [1], [0, 0, 1, 1], [], []>} : vector<16x32xf32>, vector<32x8xf32>, vector<16x8xf32> -> vector<16x8xf32>
    %129 = vector.shape_cast %128 : vector<16x8xf32> to vector<2x8x8xf32>
    %c3_95 = arith.constant 3 : index
    %c0_96 = arith.constant 0 : index
    %c0_97 = arith.constant 0 : index
    %130 = vector.load %arg9[%c3_95, %c0_96, %c0_97] : memref<4x32x8xf32, #tpu.memory_space<vmem>>, vector<1x32x8xf32>
    %131 = vector.shape_cast %130 : vector<1x32x8xf32> to vector<32x8xf32>
    %cst_98 = arith.constant dense<0.000000e+00> : vector<16x8xf32>
    %132 = tpu.matmul %0, %131, %cst_98 {dimension_numbers = #tpu.dot_dimension_numbers<[1], [0], [0], [1], [0, 0, 1, 1], [], []>} : vector<16x32xf32>, vector<32x8xf32>, vector<16x8xf32> -> vector<16x8xf32>
    %133 = vector.shape_cast %132 : vector<16x8xf32> to vector<2x8x8xf32>
    %134 = tpu.concatenate %121, %125, %129, %133 in 0 : vector<2x8x8xf32>, vector<2x8x8xf32>, vector<2x8x8xf32>, vector<2x8x8xf32> -> vector<8x8x8xf32>
    %c0_99 = arith.constant 0 : index
    %c0_100 = arith.constant 0 : index
    %c0_101 = arith.constant 0 : index
    %135 = vector.load %arg10[%c0_99, %c0_100, %c0_101] : memref<4x32x8xf32, #tpu.memory_space<vmem>>, vector<1x32x8xf32>
    %136 = vector.shape_cast %135 : vector<1x32x8xf32> to vector<32x8xf32>
    %cst_102 = arith.constant dense<0.000000e+00> : vector<16x8xf32>
    %137 = tpu.matmul %1, %136, %cst_102 {dimension_numbers = #tpu.dot_dimension_numbers<[1], [0], [0], [1], [0, 0, 1, 1], [], []>} : vector<16x32xf32>, vector<32x8xf32>, vector<16x8xf32> -> vector<16x8xf32>
    %138 = vector.shape_cast %137 : vector<16x8xf32> to vector<2x8x8xf32>
    %c1_103 = arith.constant 1 : index
    %c0_104 = arith.constant 0 : index
    %c0_105 = arith.constant 0 : index
    %139 = vector.load %arg10[%c1_103, %c0_104, %c0_105] : memref<4x32x8xf32, #tpu.memory_space<vmem>>, vector<1x32x8xf32>
    %140 = vector.shape_cast %139 : vector<1x32x8xf32> to vector<32x8xf32>
    %cst_106 = arith.constant dense<0.000000e+00> : vector<16x8xf32>
    %141 = tpu.matmul %1, %140, %cst_106 {dimension_numbers = #tpu.dot_dimension_numbers<[1], [0], [0], [1], [0, 0, 1, 1], [], []>} : vector<16x32xf32>, vector<32x8xf32>, vector<16x8xf32> -> vector<16x8xf32>
    %142 = vector.shape_cast %141 : vector<16x8xf32> to vector<2x8x8xf32>
    %c2_107 = arith.constant 2 : index
    %c0_108 = arith.constant 0 : index
    %c0_109 = arith.constant 0 : index
    %143 = vector.load %arg10[%c2_107, %c0_108, %c0_109] : memref<4x32x8xf32, #tpu.memory_space<vmem>>, vector<1x32x8xf32>
    %144 = vector.shape_cast %143 : vector<1x32x8xf32> to vector<32x8xf32>
    %cst_110 = arith.constant dense<0.000000e+00> : vector<16x8xf32>
    %145 = tpu.matmul %1, %144, %cst_110 {dimension_numbers = #tpu.dot_dimension_numbers<[1], [0], [0], [1], [0, 0, 1, 1], [], []>} : vector<16x32xf32>, vector<32x8xf32>, vector<16x8xf32> -> vector<16x8xf32>
    %146 = vector.shape_cast %145 : vector<16x8xf32> to vector<2x8x8xf32>
    %c3_111 = arith.constant 3 : index
    %c0_112 = arith.constant 0 : index
    %c0_113 = arith.constant 0 : index
    %147 = vector.load %arg10[%c3_111, %c0_112, %c0_113] : memref<4x32x8xf32, #tpu.memory_space<vmem>>, vector<1x32x8xf32>
    %148 = vector.shape_cast %147 : vector<1x32x8xf32> to vector<32x8xf32>
    %cst_114 = arith.constant dense<0.000000e+00> : vector<16x8xf32>
    %149 = tpu.matmul %1, %148, %cst_114 {dimension_numbers = #tpu.dot_dimension_numbers<[1], [0], [0], [1], [0, 0, 1, 1], [], []>} : vector<16x32xf32>, vector<32x8xf32>, vector<16x8xf32> -> vector<16x8xf32>
    %150 = vector.shape_cast %149 : vector<16x8xf32> to vector<2x8x8xf32>
    %151 = tpu.concatenate %138, %142, %146, %150 in 0 : vector<2x8x8xf32>, vector<2x8x8xf32>, vector<2x8x8xf32>, vector<2x8x8xf32> -> vector<8x8x8xf32>
    %c0_115 = arith.constant 0 : index
    %c0_116 = arith.constant 0 : index
    %c0_117 = arith.constant 0 : index
    %152 = vector.load %arg11[%c0_115, %c0_116, %c0_117] : memref<4x32x8xf32, #tpu.memory_space<vmem>>, vector<1x32x8xf32>
    %153 = vector.shape_cast %152 : vector<1x32x8xf32> to vector<32x8xf32>
    %cst_118 = arith.constant dense<0.000000e+00> : vector<16x8xf32>
    %154 = tpu.matmul %1, %153, %cst_118 {dimension_numbers = #tpu.dot_dimension_numbers<[1], [0], [0], [1], [0, 0, 1, 1], [], []>} : vector<16x32xf32>, vector<32x8xf32>, vector<16x8xf32> -> vector<16x8xf32>
    %155 = vector.shape_cast %154 : vector<16x8xf32> to vector<2x8x8xf32>
    %c1_119 = arith.constant 1 : index
    %c0_120 = arith.constant 0 : index
    %c0_121 = arith.constant 0 : index
    %156 = vector.load %arg11[%c1_119, %c0_120, %c0_121] : memref<4x32x8xf32, #tpu.memory_space<vmem>>, vector<1x32x8xf32>
    %157 = vector.shape_cast %156 : vector<1x32x8xf32> to vector<32x8xf32>
    %cst_122 = arith.constant dense<0.000000e+00> : vector<16x8xf32>
    %158 = tpu.matmul %1, %157, %cst_122 {dimension_numbers = #tpu.dot_dimension_numbers<[1], [0], [0], [1], [0, 0, 1, 1], [], []>} : vector<16x32xf32>, vector<32x8xf32>, vector<16x8xf32> -> vector<16x8xf32>
    %159 = vector.shape_cast %158 : vector<16x8xf32> to vector<2x8x8xf32>
    %c2_123 = arith.constant 2 : index
    %c0_124 = arith.constant 0 : index
    %c0_125 = arith.constant 0 : index
    %160 = vector.load %arg11[%c2_123, %c0_124, %c0_125] : memref<4x32x8xf32, #tpu.memory_space<vmem>>, vector<1x32x8xf32>
    %161 = vector.shape_cast %160 : vector<1x32x8xf32> to vector<32x8xf32>
    %cst_126 = arith.constant dense<0.000000e+00> : vector<16x8xf32>
    %162 = tpu.matmul %1, %161, %cst_126 {dimension_numbers = #tpu.dot_dimension_numbers<[1], [0], [0], [1], [0, 0, 1, 1], [], []>} : vector<16x32xf32>, vector<32x8xf32>, vector<16x8xf32> -> vector<16x8xf32>
    %163 = vector.shape_cast %162 : vector<16x8xf32> to vector<2x8x8xf32>
    %c3_127 = arith.constant 3 : index
    %c0_128 = arith.constant 0 : index
    %c0_129 = arith.constant 0 : index
    %164 = vector.load %arg11[%c3_127, %c0_128, %c0_129] : memref<4x32x8xf32, #tpu.memory_space<vmem>>, vector<1x32x8xf32>
    %165 = vector.shape_cast %164 : vector<1x32x8xf32> to vector<32x8xf32>
    %cst_130 = arith.constant dense<0.000000e+00> : vector<16x8xf32>
    %166 = tpu.matmul %1, %165, %cst_130 {dimension_numbers = #tpu.dot_dimension_numbers<[1], [0], [0], [1], [0, 0, 1, 1], [], []>} : vector<16x32xf32>, vector<32x8xf32>, vector<16x8xf32> -> vector<16x8xf32>
    %167 = vector.shape_cast %166 : vector<16x8xf32> to vector<2x8x8xf32>
    %168 = tpu.concatenate %155, %159, %163, %167 in 0 : vector<2x8x8xf32>, vector<2x8x8xf32>, vector<2x8x8xf32>, vector<2x8x8xf32> -> vector<8x8x8xf32>
    "tpu.trace_start"() <{level = 10 : i32, message = "gqd,gkd->gqk"}> : () -> ()
    %cst_131 = arith.constant dense<0.000000e+00> : vector<8x8x8xf32>
    %169 = tpu.matmul %134, %151, %cst_131 {dimension_numbers = #tpu.dot_dimension_numbers<[2], [2], [1], [1], [0, 0, 0, 1, 1, 1], [0], [0]>} : vector<8x8x8xf32>, vector<8x8x8xf32>, vector<8x8x8xf32> -> vector<8x8x8xf32>
    "tpu.trace_stop"() : () -> ()
    %cst_132 = arith.constant 0.353553385 : f32
    %170 = vector.broadcast %cst_132 : f32 to vector<8x8x8xf32>
    %171 = arith.mulf %169, %170 : vector<8x8x8xf32>
    %172 = vector.broadcast %117 : vector<8x1x8xf32> to vector<8x8x8xf32>
    %173 = arith.addf %171, %172 : vector<8x8x8xf32>
    %cst_133 = arith.constant dense<0xFF800000> : vector<8x8xf32>
    %174 = vector.multi_reduction <maximumf>, %173, %cst_133 [2] : vector<8x8x8xf32> to vector<8x8xf32>
    %175 = vector.shape_cast %174 : vector<8x8xf32> to vector<8x8x1xf32>
    %176 = vector.broadcast %175 : vector<8x8x1xf32> to vector<8x8x8xf32>
    %177 = arith.subf %173, %176 : vector<8x8x8xf32>
    %178 = math.exp %177 : vector<8x8x8xf32>
    %cst_134 = arith.constant dense<0.000000e+00> : vector<8x8xf32>
    %179 = vector.multi_reduction <add>, %178, %cst_134 [2] : vector<8x8x8xf32> to vector<8x8xf32>
    %180 = vector.shape_cast %179 : vector<8x8xf32> to vector<8x8x1xf32>
    %181 = tpu.reciprocal %180 {approx = true} : vector<8x8x1xf32> -> vector<8x8x1xf32>
    %182 = vector.broadcast %181 : vector<8x8x1xf32> to vector<8x8x8xf32>
    %183 = arith.mulf %178, %182 : vector<8x8x8xf32>
    "tpu.trace_start"() <{level = 10 : i32, message = "gqk,gkd->gqd"}> : () -> ()
    %cst_135 = arith.constant dense<0.000000e+00> : vector<8x8x8xf32>
    %184 = tpu.matmul %183, %168, %cst_135 {dimension_numbers = #tpu.dot_dimension_numbers<[2], [1], [1], [2], [0, 0, 0, 1, 1, 2], [0], [0]>} : vector<8x8x8xf32>, vector<8x8x8xf32>, vector<8x8x8xf32> -> vector<8x8x8xf32>
    "tpu.trace_stop"() : () -> ()
    %185 = vector.extract_strided_slice %184 {offsets = [0, 0, 0], sizes = [2, 8, 8], strides = [1, 1, 1]} : vector<8x8x8xf32> to vector<2x8x8xf32>
    %186 = vector.shape_cast %185 : vector<2x8x8xf32> to vector<16x8xf32>
    %c0_136 = arith.constant 0 : index
    %c0_137 = arith.constant 0 : index
    %c0_138 = arith.constant 0 : index
    %187 = vector.load %arg12[%c0_136, %c0_137, %c0_138] : memref<4x8x32xf32, #tpu.memory_space<vmem>>, vector<1x8x32xf32>
    %188 = vector.shape_cast %187 : vector<1x8x32xf32> to vector<8x32xf32>
    %cst_139 = arith.constant dense<0.000000e+00> : vector<16x32xf32>
    %189 = tpu.matmul %186, %188, %cst_139 {dimension_numbers = #tpu.dot_dimension_numbers<[1], [0], [0], [1], [0, 0, 1, 1], [], []>} : vector<16x8xf32>, vector<8x32xf32>, vector<16x32xf32> -> vector<16x32xf32>
    %190 = vector.extract_strided_slice %184 {offsets = [2, 0, 0], sizes = [2, 8, 8], strides = [1, 1, 1]} : vector<8x8x8xf32> to vector<2x8x8xf32>
    %191 = vector.shape_cast %190 : vector<2x8x8xf32> to vector<16x8xf32>
    %c1_140 = arith.constant 1 : index
    %c0_141 = arith.constant 0 : index
    %c0_142 = arith.constant 0 : index
    %192 = vector.load %arg12[%c1_140, %c0_141, %c0_142] : memref<4x8x32xf32, #tpu.memory_space<vmem>>, vector<1x8x32xf32>
    %193 = vector.shape_cast %192 : vector<1x8x32xf32> to vector<8x32xf32>
    %cst_143 = arith.constant dense<0.000000e+00> : vector<16x32xf32>
    %194 = tpu.matmul %191, %193, %cst_143 {dimension_numbers = #tpu.dot_dimension_numbers<[1], [0], [0], [1], [0, 0, 1, 1], [], []>} : vector<16x8xf32>, vector<8x32xf32>, vector<16x32xf32> -> vector<16x32xf32>
    %195 = arith.addf %189, %194 : vector<16x32xf32>
    %196 = vector.extract_strided_slice %184 {offsets = [4, 0, 0], sizes = [2, 8, 8], strides = [1, 1, 1]} : vector<8x8x8xf32> to vector<2x8x8xf32>
    %197 = vector.shape_cast %196 : vector<2x8x8xf32> to vector<16x8xf32>
    %c2_144 = arith.constant 2 : index
    %c0_145 = arith.constant 0 : index
    %c0_146 = arith.constant 0 : index
    %198 = vector.load %arg12[%c2_144, %c0_145, %c0_146] : memref<4x8x32xf32, #tpu.memory_space<vmem>>, vector<1x8x32xf32>
    %199 = vector.shape_cast %198 : vector<1x8x32xf32> to vector<8x32xf32>
    %cst_147 = arith.constant dense<0.000000e+00> : vector<16x32xf32>
    %200 = tpu.matmul %197, %199, %cst_147 {dimension_numbers = #tpu.dot_dimension_numbers<[1], [0], [0], [1], [0, 0, 1, 1], [], []>} : vector<16x8xf32>, vector<8x32xf32>, vector<16x32xf32> -> vector<16x32xf32>
    %201 = arith.addf %195, %200 : vector<16x32xf32>
    %202 = vector.extract_strided_slice %184 {offsets = [6, 0, 0], sizes = [2, 8, 8], strides = [1, 1, 1]} : vector<8x8x8xf32> to vector<2x8x8xf32>
    %203 = vector.shape_cast %202 : vector<2x8x8xf32> to vector<16x8xf32>
    %c3_148 = arith.constant 3 : index
    %c0_149 = arith.constant 0 : index
    %c0_150 = arith.constant 0 : index
    %204 = vector.load %arg12[%c3_148, %c0_149, %c0_150] : memref<4x8x32xf32, #tpu.memory_space<vmem>>, vector<1x8x32xf32>
    %205 = vector.shape_cast %204 : vector<1x8x32xf32> to vector<8x32xf32>
    %cst_151 = arith.constant dense<0.000000e+00> : vector<16x32xf32>
    %206 = tpu.matmul %203, %205, %cst_151 {dimension_numbers = #tpu.dot_dimension_numbers<[1], [0], [0], [1], [0, 0, 1, 1], [], []>} : vector<16x8xf32>, vector<8x32xf32>, vector<16x32xf32> -> vector<16x32xf32>
    %207 = arith.addf %201, %206 : vector<16x32xf32>
    %208 = arith.addf %116, %207 : vector<16x32xf32>
    %c0_152 = arith.constant 0 : index
    %c0_153 = arith.constant 0 : index
    %209 = vector.load %arg15[%c0_152, %c0_153] : memref<1x32xf32, #tpu.memory_space<vmem>>, vector<1x32xf32>
    %c0_154 = arith.constant 0 : index
    %c0_155 = arith.constant 0 : index
    %210 = vector.load %arg16[%c0_154, %c0_155] : memref<1x32xf32, #tpu.memory_space<vmem>>, vector<1x32xf32>
    %cst_156 = arith.constant dense<0.000000e+00> : vector<16xf32>
    %211 = vector.multi_reduction <add>, %208, %cst_156 [1] : vector<16x32xf32> to vector<16xf32>
    %212 = vector.shape_cast %211 : vector<16xf32> to vector<16x1xf32>
    %cst_157 = arith.constant 3.200000e+01 : f32
    %213 = vector.broadcast %cst_157 : f32 to vector<16x1xf32>
    %214 = arith.divf %212, %213 : vector<16x1xf32>
    %215 = vector.broadcast %214 : vector<16x1xf32> to vector<16x32xf32>
    %216 = arith.subf %208, %215 : vector<16x32xf32>
    %217 = arith.mulf %216, %216 : vector<16x32xf32>
    %cst_158 = arith.constant dense<0.000000e+00> : vector<16xf32>
    %218 = vector.multi_reduction <add>, %217, %cst_158 [1] : vector<16x32xf32> to vector<16xf32>
    %219 = vector.shape_cast %218 : vector<16xf32> to vector<16x1xf32>
    %cst_159 = arith.constant 3.200000e+01 : f32
    %220 = vector.broadcast %cst_159 : f32 to vector<16x1xf32>
    %221 = arith.divf %219, %220 : vector<16x1xf32>
    %222 = vector.broadcast %214 : vector<16x1xf32> to vector<16x32xf32>
    %223 = arith.subf %208, %222 : vector<16x32xf32>
    %cst_160 = arith.constant 9.99999974E-6 : f32
    %224 = vector.broadcast %cst_160 : f32 to vector<16x1xf32>
    %225 = arith.addf %221, %224 : vector<16x1xf32>
    %226 = math.rsqrt %225 : vector<16x1xf32>
    %227 = vector.broadcast %226 : vector<16x1xf32> to vector<16x32xf32>
    %228 = arith.mulf %223, %227 : vector<16x32xf32>
    %229 = vector.broadcast %209 : vector<1x32xf32> to vector<16x32xf32>
    %230 = arith.mulf %228, %229 : vector<16x32xf32>
    %231 = vector.broadcast %210 : vector<1x32xf32> to vector<16x32xf32>
    %232 = arith.addf %230, %231 : vector<16x32xf32>
    %c0_161 = arith.constant 0 : index
    %c0_162 = arith.constant 0 : index
    %233 = vector.load %arg19[%c0_161, %c0_162] : memref<32x64xf32, #tpu.memory_space<vmem>>, vector<32x64xf32>
    %cst_163 = arith.constant dense<0.000000e+00> : vector<16x64xf32>
    %234 = tpu.matmul %232, %233, %cst_163 {dimension_numbers = #tpu.dot_dimension_numbers<[1], [0], [0], [1], [0, 0, 1, 1], [], []>} : vector<16x32xf32>, vector<32x64xf32>, vector<16x64xf32> -> vector<16x64xf32>
    %c0_164 = arith.constant 0 : index
    %c0_165 = arith.constant 0 : index
    %235 = vector.load %arg20[%c0_164, %c0_165] : memref<1x64xf32, #tpu.memory_space<vmem>>, vector<1x64xf32>
    %236 = vector.broadcast %235 : vector<1x64xf32> to vector<16x64xf32>
    %237 = arith.addf %234, %236 : vector<16x64xf32>
    %cst_166 = arith.constant 0.000000e+00 : f32
    %238 = vector.broadcast %cst_166 : f32 to vector<16x64xf32>
    %239 = arith.maximumf %237, %238 : vector<16x64xf32>
    %c0_167 = arith.constant 0 : index
    %c0_168 = arith.constant 0 : index
    %240 = vector.load %arg21[%c0_167, %c0_168] : memref<64x32xf32, #tpu.memory_space<vmem>>, vector<64x32xf32>
    %cst_169 = arith.constant dense<0.000000e+00> : vector<16x32xf32>
    %241 = tpu.matmul %239, %240, %cst_169 {dimension_numbers = #tpu.dot_dimension_numbers<[1], [0], [0], [1], [0, 0, 1, 1], [], []>} : vector<16x64xf32>, vector<64x32xf32>, vector<16x32xf32> -> vector<16x32xf32>
    %c0_170 = arith.constant 0 : index
    %c0_171 = arith.constant 0 : index
    %242 = vector.load %arg22[%c0_170, %c0_171] : memref<1x32xf32, #tpu.memory_space<vmem>>, vector<1x32xf32>
    %243 = vector.broadcast %242 : vector<1x32xf32> to vector<16x32xf32>
    %244 = arith.addf %241, %243 : vector<16x32xf32>
    %245 = arith.addf %232, %244 : vector<16x32xf32>
    %c0_172 = arith.constant 0 : index
    %c0_173 = arith.constant 0 : index
    %246 = vector.load %arg17[%c0_172, %c0_173] : memref<1x32xf32, #tpu.memory_space<vmem>>, vector<1x32xf32>
    %c0_174 = arith.constant 0 : index
    %c0_175 = arith.constant 0 : index
    %247 = vector.load %arg18[%c0_174, %c0_175] : memref<1x32xf32, #tpu.memory_space<vmem>>, vector<1x32xf32>
    %cst_176 = arith.constant dense<0.000000e+00> : vector<16xf32>
    %248 = vector.multi_reduction <add>, %245, %cst_176 [1] : vector<16x32xf32> to vector<16xf32>
    %249 = vector.shape_cast %248 : vector<16xf32> to vector<16x1xf32>
    %cst_177 = arith.constant 3.200000e+01 : f32
    %250 = vector.broadcast %cst_177 : f32 to vector<16x1xf32>
    %251 = arith.divf %249, %250 : vector<16x1xf32>
    %252 = vector.broadcast %251 : vector<16x1xf32> to vector<16x32xf32>
    %253 = arith.subf %245, %252 : vector<16x32xf32>
    %254 = arith.mulf %253, %253 : vector<16x32xf32>
    %cst_178 = arith.constant dense<0.000000e+00> : vector<16xf32>
    %255 = vector.multi_reduction <add>, %254, %cst_178 [1] : vector<16x32xf32> to vector<16xf32>
    %256 = vector.shape_cast %255 : vector<16xf32> to vector<16x1xf32>
    %cst_179 = arith.constant 3.200000e+01 : f32
    %257 = vector.broadcast %cst_179 : f32 to vector<16x1xf32>
    %258 = arith.divf %256, %257 : vector<16x1xf32>
    %259 = vector.broadcast %251 : vector<16x1xf32> to vector<16x32xf32>
    %260 = arith.subf %245, %259 : vector<16x32xf32>
    %cst_180 = arith.constant 9.99999974E-6 : f32
    %261 = vector.broadcast %cst_180 : f32 to vector<16x1xf32>
    %262 = arith.addf %258, %261 : vector<16x1xf32>
    %263 = math.rsqrt %262 : vector<16x1xf32>
    %264 = vector.broadcast %263 : vector<16x1xf32> to vector<16x32xf32>
    %265 = arith.mulf %260, %264 : vector<16x32xf32>
    %266 = vector.broadcast %246 : vector<1x32xf32> to vector<16x32xf32>
    %267 = arith.mulf %265, %266 : vector<16x32xf32>
    %268 = vector.broadcast %247 : vector<1x32xf32> to vector<16x32xf32>
    %269 = arith.addf %267, %268 : vector<16x32xf32>
    %270 = vector.shape_cast %269 : vector<16x32xf32> to vector<2x8x32xf32>
    %c0_181 = arith.constant 0 : index
    %c0_182 = arith.constant 0 : index
    %c0_183 = arith.constant 0 : index
    %271 = vector.load %arg23[%c0_181, %c0_182, %c0_183] : memref<2x8x32xf32, #tpu.memory_space<vmem>>, vector<2x8x32xf32>
    tpu.vector_store %arg23[%c0_181, %c0_182, %c0_183], %270 {strides = array<i32>} : memref<2x8x32xf32, #tpu.memory_space<vmem>>, vector<2x8x32xf32>,
    return
  }
  func.func @transform_0(%arg0: i32) -> (i32, i32) {
    %c0_i32 = arith.constant 0 : i32
    %c0_i32_0 = arith.constant 0 : i32
    %c0_i32_1 = arith.constant 0 : i32
    return %c0_i32, %c0_i32_0 : i32, i32
  }
  func.func @transform_1(%arg0: i32) -> (i32, i32) {
    %c0_i32 = arith.constant 0 : i32
    %c0_i32_0 = arith.constant 0 : i32
    %c0_i32_1 = arith.constant 0 : i32
    return %c0_i32, %c0_i32_0 : i32, i32
  }
  func.func @transform_2(%arg0: i32) -> (i32, i32, i32) {
    %c0_i32 = arith.constant 0 : i32
    %c0_i32_0 = arith.constant 0 : i32
    %c0_i32_1 = arith.constant 0 : i32
    %c0_i32_2 = arith.constant 0 : i32
    return %c0_i32, %c0_i32_0, %c0_i32_1 : i32, i32, i32
  }
  func.func @transform_3(%arg0: i32) -> (i32, i32, i32) {
    %c0_i32 = arith.constant 0 : i32
    %c0_i32_0 = arith.constant 0 : i32
    %c0_i32_1 = arith.constant 0 : i32
    %c0_i32_2 = arith.constant 0 : i32
    return %c0_i32, %c0_i32_0, %c0_i32_1 : i32, i32, i32
  }
  func.func @transform_4(%arg0: i32) -> (i32, i32, i32) {
    %c0_i32 = arith.constant 0 : i32
    %c0_i32_0 = arith.constant 0 : i32
    %c0_i32_1 = arith.constant 0 : i32
    %c0_i32_2 = arith.constant 0 : i32
    return %c0_i32, %c0_i32_0, %c0_i32_1 : i32, i32, i32
  }
  func.func @transform_5(%arg0: i32) -> (i32, i32, i32) {
    %c0_i32 = arith.constant 0 : i32
    %c0_i32_0 = arith.constant 0 : i32
    %c0_i32_1 = arith.constant 0 : i32
    %c0_i32_2 = arith.constant 0 : i32
    return %c0_i32, %c0_i32_0, %c0_i32_1 : i32, i32, i32
  }
  func.func @transform_6(%arg0: i32) -> (i32, i32, i32) {
    %c0_i32 = arith.constant 0 : i32
    %c0_i32_0 = arith.constant 0 : i32
    %c0_i32_1 = arith.constant 0 : i32
    %c0_i32_2 = arith.constant 0 : i32
    return %c0_i32, %c0_i32_0, %c0_i32_1 : i32, i32, i32
  }
  func.func @transform_7(%arg0: i32) -> (i32, i32, i32) {
    %c0_i32 = arith.constant 0 : i32
    %c0_i32_0 = arith.constant 0 : i32
    %c0_i32_1 = arith.constant 0 : i32
    %c0_i32_2 = arith.constant 0 : i32
    return %c0_i32, %c0_i32_0, %c0_i32_1 : i32, i32, i32
  }
  func.func @transform_8(%arg0: i32) -> (i32, i32, i32) {
    %c0_i32 = arith.constant 0 : i32
    %c0_i32_0 = arith.constant 0 : i32
    %c0_i32_1 = arith.constant 0 : i32
    %c0_i32_2 = arith.constant 0 : i32
    return %c0_i32, %c0_i32_0, %c0_i32_1 : i32, i32, i32
  }
  func.func @transform_9(%arg0: i32) -> (i32, i32, i32) {
    %c0_i32 = arith.constant 0 : i32
    %c0_i32_0 = arith.constant 0 : i32
    %c0_i32_1 = arith.constant 0 : i32
    %c0_i32_2 = arith.constant 0 : i32
    return %c0_i32, %c0_i32_0, %c0_i32_1 : i32, i32, i32
  }
  func.func @transform_10(%arg0: i32) -> (i32, i32, i32) {
    %c0_i32 = arith.constant 0 : i32
    %c0_i32_0 = arith.constant 0 : i32
    %c0_i32_1 = arith.constant 0 : i32
    %c0_i32_2 = arith.constant 0 : i32
    return %c0_i32, %c0_i32_0, %c0_i32_1 : i32, i32, i32
  }
  func.func @transform_11(%arg0: i32) -> (i32, i32, i32) {
    %c0_i32 = arith.constant 0 : i32
    %c0_i32_0 = arith.constant 0 : i32
    %c0_i32_1 = arith.constant 0 : i32
    %c0_i32_2 = arith.constant 0 : i32
    return %c0_i32, %c0_i32_0, %c0_i32_1 : i32, i32, i32
  }
  func.func @transform_12(%arg0: i32) -> (i32, i32) {
    %c0_i32 = arith.constant 0 : i32
    %c0_i32_0 = arith.constant 0 : i32
    %c0_i32_1 = arith.constant 0 : i32
    return %c0_i32, %c0_i32_0 : i32, i32
  }
  func.func @transform_13(%arg0: i32) -> (i32, i32) {
    %c0_i32 = arith.constant 0 : i32
    %c0_i32_0 = arith.constant 0 : i32
    %c0_i32_1 = arith.constant 0 : i32
    return %c0_i32, %c0_i32_0 : i32, i32
  }
  func.func @transform_14(%arg0: i32) -> (i32, i32) {
    %c0_i32 = arith.constant 0 : i32
    %c0_i32_0 = arith.constant 0 : i32
    %c0_i32_1 = arith.constant 0 : i32
    return %c0_i32, %c0_i32_0 : i32, i32
  }
  func.func @transform_15(%arg0: i32) -> (i32, i32) {
    %c0_i32 = arith.constant 0 : i32
    %c0_i32_0 = arith.constant 0 : i32
    %c0_i32_1 = arith.constant 0 : i32
    return %c0_i32, %c0_i32_0 : i32, i32
  }
  func.func @transform_16(%arg0: i32) -> (i32, i32) {
    %c0_i32 = arith.constant 0 : i32
    %c0_i32_0 = arith.constant 0 : i32
    %c0_i32_1 = arith.constant 0 : i32
    return %c0_i32, %c0_i32_0 : i32, i32
  }
  func.func @transform_17(%arg0: i32) -> (i32, i32) {
    %c0_i32 = arith.constant 0 : i32
    %c0_i32_0 = arith.constant 0 : i32
    %c0_i32_1 = arith.constant 0 : i32
    return %c0_i32, %c0_i32_0 : i32, i32
  }
  func.func @transform_18(%arg0: i32) -> (i32, i32) {
    %c0_i32 = arith.constant 0 : i32
    %c0_i32_0 = arith.constant 0 : i32
    %c0_i32_1 = arith.constant 0 : i32
    return %c0_i32, %c0_i32_0 : i32, i32
  }
  func.func @transform_19(%arg0: i32) -> (i32, i32) {
    %c0_i32 = arith.constant 0 : i32
    %c0_i32_0 = arith.constant 0 : i32
    %c0_i32_1 = arith.constant 0 : i32
    return %c0_i32, %c0_i32_0 : i32, i32
  }
  func.func @transform_20(%arg0: i32) -> (i32, i32) {
    %c0_i32 = arith.constant 0 : i32
    %c0_i32_0 = arith.constant 0 : i32
    %c0_i32_1 = arith.constant 0 : i32
    return %c0_i32, %c0_i32_0 : i32, i32
  }
  func.func @transform_21(%arg0: i32) -> (i32, i32) {
    %c0_i32 = arith.constant 0 : i32
    %c0_i32_0 = arith.constant 0 : i32
    %c0_i32_1 = arith.constant 0 : i32
    return %c0_i32, %c0_i32_0 : i32, i32
  }
  func.func @transform_22(%arg0: i32) -> (i32, i32, i32) {
    %c0_i32 = arith.constant 0 : i32
    %c0_i32_0 = arith.constant 0 : i32
    %c0_i32_1 = arith.constant 0 : i32
    %c0_i32_2 = arith.constant 0 : i32
    return %c0_i32, %c0_i32_0, %c0_i32_1 : i32, i32, i32
  }
}

</mosaic_0001>

<bundles_post_ra>
// kernel: tpu_custom_call.1
= control target key start
LH: loop header
LB: loop body
LE: loop exit
PB: predicated region body
PF: predicated region fallthrough
CT: control target
= control target key end

     0   :  { %s7921_s0 = inlined_call_operand.vmem [shape: f32[16,32], index: 0, kind: input, shape index: {}]   ;;  %s7922_s1 = inlined_call_operand.vmem [shape: f32[16,32], index: 1, kind: input, shape index: {}]   ;;  %s7923_s2 = inlined_call_operand.vmem [shape: f32[8,8,8], index: 2, kind: input, shape index: {}]   ;;  %s7924_s3 = inlined_call_operand.vmem [shape: f32[8,1,8], index: 3, kind: input, shape index: {}]   ;;  %s7925_s4 = inlined_call_operand.vmem [shape: f32[4,32,8], index: 4, kind: input, shape index: {}]   ;;  %s7926_s5 = inlined_call_operand.vmem [shape: f32[4,32,8], index: 5, kind: input, shape index: {}]   ;;  %s7927_s6 = inlined_call_operand.vmem [shape: f32[4,32,8], index: 6, kind: input, shape index: {}]   ;;  %s7928_s7 = inlined_call_operand.vmem [shape: f32[4,8,32], index: 7, kind: input, shape index: {}]   ;;  %s7929_s8 = inlined_call_operand.vmem [shape: f32[4,32,8], index: 8, kind: input, shape index: {}]   ;;  %s7930_s9 = inlined_call_operand.vmem [shape: f32[4,32,8], index: 9, kind: input, shape index: {}]   ;;  %s7931_s10 = inlined_call_operand.vmem [shape: f32[4,32,8], index: 10, kind: input, shape index: {}]   ;;  %s7932_s11 = inlined_call_operand.vmem [shape: f32[4,8,32], index: 11, kind: input, shape index: {}]   ;;  %s7933_s12 = inlined_call_operand.vmem [shape: f32[1,32], index: 12, kind: input, shape index: {}]   ;;  %s7934_s13 = inlined_call_operand.vmem [shape: f32[1,32], index: 13, kind: input, shape index: {}]   ;;  %s7935_s14 = inlined_call_operand.vmem [shape: f32[1,32], index: 14, kind: input, shape index: {}]   ;;  %s7936_s15 = inlined_call_operand.vmem [shape: f32[1,32], index: 15, kind: input, shape index: {}]   ;;  %s7937_s16 = inlined_call_operand.vmem [shape: f32[1,32], index: 16, kind: input, shape index: {}]   ;;  %s7938_s17 = inlined_call_operand.vmem [shape: f32[1,32], index: 17, kind: input, shape index: {}]   ;;  %s7939_s18 = inlined_call_operand.vmem [shape: f32[32,64], index: 18, kind: input, shape index: {}]   ;;  %s7940_s19 = inlined_call_operand.vmem [shape: f32[1,64], index: 19, kind: input, shape index: {}]   ;;  %s7941_s20 = inlined_call_operand.vmem [shape: f32[64,32], index: 20, kind: input, shape index: {}]   ;;  %s7942_s21 = inlined_call_operand.vmem [shape: f32[1,32], index: 21, kind: input, shape index: {}]   ;;  %s7943_s22 = inlined_call_operand.hbm [shape: f32[2,8,32], index: 22, kind: output, shape index: {}]  }
   0x1   :  { %7951 = sst [smem:[#allocation5_spill]] %s7921_s0 }
   0x2   :  { %7952 = sst [smem:[#allocation6_spill]] %s7922_s1 }
   0x3   :  { %7953 = sst [smem:[#allocation7_spill]] %s7923_s2 }
   0x4   :  { %7954 = sst [smem:[#allocation8_spill]] %s7924_s3 }
   0x5   :  { %7955 = sst [smem:[#allocation9_spill]] %s7925_s4 }
   0x6   :  { %7956 = sst [smem:[#allocation10_spill]] %s7926_s5 }
   0x7   :  { %7957 = sst [smem:[#allocation11_spill]] %s7927_s6 }
   0x8   :  { %s7958_s29 = sld [smem:[#allocation9_spill]]  ;;  %vm88_vm0 = vcmask 261120   ;;  %s7959_s0 = sld [smem:[#allocation6_spill]] }
   0x9   :  { %s7960_s2 = sld [smem:[#allocation10_spill]] }
   0xe   :  { %v84_v0 = vld [vmem:[%s7958_s29] sm:$0xff]  ;;  %v85_v1 = vld [vmem:[%s7958_s29 + $0x8] sm:$0xff]  ;;  %v86_v5 = vld [vmem:[%s7958_s29 + $0x10] sm:$0xff] }
   0xf   :  { %v5680_v2 = vld [vmem:[%s7958_s29 + $0x20] sm:$0xff]  ;;  %v6630_v3 = vpack.c.bf16 %v85_v1, %v84_v0  ;;  %v5681_v4 = vld [vmem:[%s7958_s29 + $0x28] sm:$0xff]  ;;  %v87_v6 = vld [vmem:[%s7958_s29 + $0x18] sm:$0xff] }
  0x10   :  { %v6638_v7 = vpack.c.bf16 %v5681_v4, %v5680_v2  ;;  %v6634_v8 = vpack.c.bf16 %v87_v6, %v86_v5  ;;  %v5682_v9 = vld [vmem:[%s7958_s29 + $0x30] sm:$0xff]  ;;  %v5683_v10 = vld [vmem:[%s7958_s29 + $0x38] sm:$0xff]  ;;  %v7112_v11 = vld [vmem:[%s7959_s0] sm:$0xff] }
  0x11   :  { %6631 = vmatprep.subr.bf16.mxu0 %v6630_v3  ;;  %v6642_v12 = vpack.c.bf16 %v5683_v10, %v5682_v9  ;;  %6144 = vmatprep.mubr.msk.f32.mxu0 %vm88_vm0, %v7112_v11  ;;  %v5686_v13 = vld [vmem:[%s7958_s29 + $0x40] sm:$0xff]  ;;  %v5687_v14 = vld [vmem:[%s7958_s29 + $0x48] sm:$0xff]  ;;  %v5688_v19 = vld [vmem:[%s7958_s29 + $0x50] sm:$0xff] }
  0x12   :  { %6639 = vmatprep.subr.bf16.mxu1 %v6638_v7  ;;  %6633 = vmatpush3.bf16.msra.mxu0 %v6630_v3  ;;  %v5692_v15 = vld [vmem:[%s7958_s29 + $0x60] sm:$0xff]  ;;  %v5693_v16 = vld [vmem:[%s7958_s29 + $0x68] sm:$0xff]  ;;  %v6646_v17 = vpack.c.bf16 %v5687_v14, %v5686_v13  ;;  %v5689_v20 = vld [vmem:[%s7958_s29 + $0x58] sm:$0xff] }
  0x13   :  { %6641 = vmatpush3.bf16.msra.mxu1 %v6638_v7  ;;  %6635 = vmatprep.subr.bf16.mxu0 %v6634_v8  ;;  %v6654_v18 = vpack.c.bf16 %v5693_v16, %v5692_v15  ;;  %v5694_v21 = vld [vmem:[%s7958_s29 + $0x70] sm:$0xff]  ;;  %v5695_v22 = vld [vmem:[%s7958_s29 + $0x78] sm:$0xff]  ;;  %v7145_v23 = vld [vmem:[%s7959_s0 + $0x8] sm:$0xff]  ;;  %v6650_v24 = vpack.c.bf16 %v5689_v20, %v5688_v19 }
  0x14   :  { %6643 = vmatprep.subr.bf16.mxu1 %v6642_v12  ;;  %6155 = vmatprep.mubr.msk.f32.mxu1 %vm88_vm0, %v7112_v11  ;;  %v6658_v25 = vpack.c.bf16 %v5695_v22, %v5694_v21  ;;  %v410_v26 = vld [vmem:[%s7960_s2] sm:$0xff]  ;;  %v411_v27 = vld [vmem:[%s7960_s2 + $0x8] sm:$0xff] }
  0x15   :  { %v5700_v28 = vld [vmem:[%s7960_s2 + $0x20] sm:$0xff]  ;;  %v5701_v29 = vld [vmem:[%s7960_s2 + $0x28] sm:$0xff]  ;;  %v6662_v30 = vpack.c.bf16 %v411_v27, %v410_v26 }
  0x16   :  { %6637 = vmatpush3.bf16.msra.mxu0 %v6634_v8 }
  0x17   :  { %6645 = vmatpush3.bf16.msra.mxu1 %v6642_v12  ;;  %6647 = vmatprep.subr.bf16.mxu0 %v6646_v17 }
  0x18   :  { %6655 = vmatprep.subr.bf16.mxu1 %v6654_v18 }
  0x19   :  { %6145 = vmatmul.mubr.msk.f32.vlgmr.msra.gmra.mrb[0].mxu0 %vm88_vm0, %v7145_v23 }
  0x1a   :  { %6156 = vmatmul.mubr.msk.f32.vlgmr.msra.gmra.mrb[0].mxu1 %vm88_vm0, %v7145_v23  ;;  %6649 = vmatpush3.bf16.msra.mxu0 %v6646_v17 }
  0x1b   :  { %6657 = vmatpush3.bf16.msra.mxu1 %v6654_v18  ;;  %6651 = vmatprep.subr.bf16.mxu0 %v6650_v24 }
  0x1c   :  { %27 = vsyncpa [#allocation3], 0  ;;  %6659 = vmatprep.subr.bf16.mxu1 %v6658_v25  ;;  %6166 = vmatprep.mubr.msk.f32.mxu0 %vm88_vm0, %v7112_v11  ;;  %v6670_v31 = vpack.c.bf16 %v5701_v29, %v5700_v28  ;;  %v412_v32 = vld [vmem:[%s7960_s2 + $0x10] sm:$0xff]  ;;  %v413_v33 = vld [vmem:[%s7960_s2 + $0x18] sm:$0xff]  ;;  %s7961_s23 = sld [smem:[#allocation11_spill]]  ;;  %v6965_v10 = vmov 0.0  }
  0x1d   :  { %6177 = vmatprep.mubr.msk.f32.mxu1 %vm88_vm0, %v7112_v11  ;;  %v5702_v34 = vld [vmem:[%s7960_s2 + $0x30] sm:$0xff]  ;;  %v5703_v35 = vld [vmem:[%s7960_s2 + $0x38] sm:$0xff]  ;;  %v6666_v36 = vpack.c.bf16 %v413_v33, %v412_v32  ;;  %v5706_v38 = vld [vmem:[%s7960_s2 + $0x40] sm:$0xff]  ;;  %vm6966_vm1 = vmmov 0   ;;  %vm1048_vm2 = vcmask 64512   ;;  %s7962_s25 = sld [smem:[#allocation7_spill]] }
  0x1e   :  { %6653 = vmatpush3.bf16.msra.mxu0 %v6650_v24  ;;  %v6674_v37 = vpack.c.bf16 %v5703_v35, %v5702_v34  ;;  %v5707_v39 = vld [vmem:[%s7960_s2 + $0x48] sm:$0xff]  ;;  %v5712_v40 = vld [vmem:[%s7960_s2 + $0x60] sm:$0xff]  ;;  %v5708_v43 = vld [vmem:[%s7960_s2 + $0x50] sm:$0xff]  ;;  %s7964_s1 = sld [smem:[#allocation8_spill]]  ;;  %vm5532_vm3 = vcmask 523264  }
  0x1f   :  { %6661 = vmatpush3.bf16.msra.mxu1 %v6658_v25  ;;  %6663 = vmatprep.subr.bf16.mxu0 %v6662_v30  ;;  %v5713_v41 = vld [vmem:[%s7960_s2 + $0x68] sm:$0xff]  ;;  %v6678_v42 = vpack.c.bf16 %v5707_v39, %v5706_v38  ;;  %v5709_v44 = vld [vmem:[%s7960_s2 + $0x58] sm:$0xff]  ;;  %v5714_v46 = vld [vmem:[%s7960_s2 + $0x70] sm:$0xff] }
  0x20   :  { %6671 = vmatprep.subr.bf16.mxu1 %v6670_v31  ;;  %v6686_v45 = vpack.c.bf16 %v5713_v41, %v5712_v40  ;;  %v5715_v47 = vld [vmem:[%s7960_s2 + $0x78] sm:$0xff]  ;;  %v6682_v48 = vpack.c.bf16 %v5709_v44, %v5708_v43 }
  0x21   :  { %6167 = vmatmul.mubr.msk.f32.vlgmr.msra.gmra.mrb[2].mxu0 %vm88_vm0, %v7145_v23  ;;  %v6690_v49 = vpack.c.bf16 %v5715_v47, %v5714_v46 }
  0x22   :  { %6178 = vmatmul.mubr.msk.f32.vlgmr.msra.gmra.mrb[2].mxu1 %vm88_vm0, %v7145_v23  ;;  %6665 = vmatpush3.bf16.msra.mxu0 %v6662_v30  ;;  %v729_v50 = vld [vmem:[%s7961_s23] sm:$0xff]  ;;  %v730_v51 = vld [vmem:[%s7961_s23 + $0x8] sm:$0xff]  ;;  %v5722_v56 = vld [vmem:[%s7961_s23 + $0x30] sm:$0xff] }
  0x23   :  { %6673 = vmatpush3.bf16.msra.mxu1 %v6670_v31  ;;  %6667 = vmatprep.subr.bf16.mxu0 %v6666_v36  ;;  %v5720_v52 = vld [vmem:[%s7961_s23 + $0x20] sm:$0xff]  ;;  %v5721_v53 = vld [vmem:[%s7961_s23 + $0x28] sm:$0xff]  ;;  %v6694_v54 = vpack.c.bf16 %v730_v51, %v729_v50  ;;  %v5723_v57 = vld [vmem:[%s7961_s23 + $0x38] sm:$0xff] }
  0x24   :  { %6675 = vmatprep.subr.bf16.mxu1 %v6674_v37  ;;  %6188 = vmatprep.mubr.msk.f32.mxu0 %vm88_vm0, %v7112_v11  ;;  %v6702_v55 = vpack.c.bf16 %v5721_v53, %v5720_v52  ;;  %v6706_v58 = vpack.c.bf16 %v5723_v57, %v5722_v56  ;;  %v731_v59 = vld [vmem:[%s7961_s23 + $0x10] sm:$0xff]  ;;  %v732_v60 = vld [vmem:[%s7961_s23 + $0x18] sm:$0xff]  ;;  %v5732_v62 = vld [vmem:[%s7961_s23 + $0x60] sm:$0xff] }
  0x25   :  { %6199 = vmatprep.mubr.msk.f32.mxu1 %vm88_vm0, %v7112_v11  ;;  %v6698_v61 = vpack.c.bf16 %v732_v60, %v731_v59  ;;  %v5733_v63 = vld [vmem:[%s7961_s23 + $0x68] sm:$0xff]  ;;  %v5726_v0 = vld [vmem:[%s7961_s23 + $0x40] sm:$0xff]  ;;  %v5734_v3 = vld [vmem:[%s7961_s23 + $0x70] sm:$0xff] }
  0x26   :  { %6669 = vmatpush3.bf16.msra.mxu0 %v6666_v36  ;;  %v6718_v1 = vpack.c.bf16 %v5733_v63, %v5732_v62  ;;  %v5727_v2 = vld [vmem:[%s7961_s23 + $0x48] sm:$0xff]  ;;  %v5735_v4 = vld [vmem:[%s7961_s23 + $0x78] sm:$0xff]  ;;  %v5728_v7 = vld [vmem:[%s7961_s23 + $0x50] sm:$0xff] }
  0x27   :  { %6677 = vmatpush3.bf16.msra.mxu1 %v6674_v37  ;;  %6679 = vmatprep.subr.bf16.mxu0 %v6678_v42  ;;  %v6710_v5 = vpack.c.bf16 %v5727_v2, %v5726_v0  ;;  %v6722_v6 = vpack.c.bf16 %v5735_v4, %v5734_v3  ;;  %v5729_v8 = vld [vmem:[%s7961_s23 + $0x58] sm:$0xff]  ;;  %v76_v39 = vld [vmem:[%s7962_s25] sm:$0xff] }
  0x28   :  { %6687 = vmatprep.subr.bf16.mxu1 %v6686_v45  ;;  %v6714_v9 = vpack.c.bf16 %v5729_v8, %v5728_v7  ;;  %v80_v0 = vld [vmem:[%s7962_s25 + $0x20] sm:$0xff] }
  0x29   :  { %6189 = vmatmul.mubr.msk.f32.vlgmr.msra.gmra.mrb[4].mxu0 %vm88_vm0, %v7145_v23 }
  0x2a   :  { %6200 = vmatmul.mubr.msk.f32.vlgmr.msra.gmra.mrb[4].mxu1 %vm88_vm0, %v7145_v23  ;;  %6681 = vmatpush3.bf16.msra.mxu0 %v6678_v42 }
  0x2b   :  { %6683 = vmatprep.subr.bf16.mxu0 %v6682_v48  ;;  %6689 = vmatpush3.bf16.msra.mxu1 %v6686_v45  ;;  %v77_v45 = vld [vmem:[%s7962_s25 + $0x8] sm:$0xff] }
  0x2c   :  { %6210 = vmatprep.mubr.msk.f32.mxu0 %vm88_vm0, %v7112_v11  ;;  %6691 = vmatprep.subr.bf16.mxu1 %v6690_v49 }
  0x2d   :  { %6221 = vmatprep.mubr.msk.f32.mxu1 %vm88_vm0, %v7112_v11 }
  0x2e   :  { %6685 = vmatpush3.bf16.msra.mxu0 %v6682_v48 }
  0x2f   :  { %6693 = vmatpush3.bf16.msra.mxu1 %v6690_v49  ;;  %6695 = vmatprep.subr.bf16.mxu0 %v6694_v54 }
  0x30   :  { %6703 = vmatprep.subr.bf16.mxu1 %v6702_v55 }
  0x31   :  { %6211 = vmatmul.mubr.msk.f32.vlgmr.msra.gmra.mrb[6].mxu0 %vm88_vm0, %v7145_v23 }
  0x32   :  { %6222 = vmatmul.mubr.msk.f32.vlgmr.msra.gmra.mrb[6].mxu1 %vm88_vm0, %v7145_v23  ;;  %6697 = vmatpush3.bf16.msra.mxu0 %v6694_v54  ;;  %v78_v54 = vld [vmem:[%s7962_s25 + $0x10] sm:$0xff] }
  0x33   :  { %6705 = vmatpush3.bf16.msra.mxu1 %v6702_v55  ;;  %6232 = vmatprep.mubr.msk.f32.mxu0 %vm88_vm0, %v7112_v11 }
  0x34   :  { %6707 = vmatprep.subr.bf16.mxu1 %v6706_v58  ;;  %6243 = vmatprep.mubr.msk.f32.mxu1 %vm88_vm0, %v7112_v11 }
  0x35   :  { %6699 = vmatprep.subr.bf16.mxu0 %v6698_v61 }
  0x36   :  { %6701 = vmatpush3.bf16.msra.mxu0 %v6698_v61 }
  0x37   :  { %6709 = vmatpush3.bf16.msra.mxu1 %v6706_v58  ;;  %6711 = vmatprep.subr.bf16.mxu0 %v6710_v5  ;;  %v79_v58 = vld [vmem:[%s7962_s25 + $0x18] sm:$0xff] }
  0x38   :  { %6719 = vmatprep.subr.bf16.mxu1 %v6718_v1 }
  0x39   :  { %6233 = vmatmul.mubr.msk.f32.vlgmr.msra.gmra.mrb[8].mxu0 %vm88_vm0, %v7145_v23 }
  0x3a   :  { %6244 = vmatmul.mubr.msk.f32.vlgmr.msra.gmra.mrb[8].mxu1 %vm88_vm0, %v7145_v23  ;;  %6713 = vmatpush3.bf16.msra.mxu0 %v6710_v5  ;;  %v81_v5 = vld [vmem:[%s7962_s25 + $0x28] sm:$0xff] }
  0x3b   :  { %6265 = vmatprep.mubr.msk.f32.mxu1 %vm88_vm0, %v7112_v11  ;;  %6721 = vmatpush3.bf16.msra.mxu1 %v6718_v1 }
  0x3c   :  { %6723 = vmatprep.subr.bf16.mxu1 %v6722_v6  ;;  %6254 = vmatprep.mubr.msk.f32.mxu0 %vm88_vm0, %v7112_v11 }
  0x3d   :  { %6715 = vmatprep.subr.bf16.mxu0 %v6714_v9 }
  0x3e   :  { %6717 = vmatpush3.bf16.msra.mxu0 %v6714_v9  ;;  %v82_v9 = vld [vmem:[%s7962_s25 + $0x30] sm:$0xff] }
  0x3f   :  { %6725 = vmatpush3.bf16.msra.mxu1 %v6722_v6  ;;  %6268 = vmatprep.subr.mxu0 %v6965_v10 }
  0x40   :  { %6283 = vmatprep.subr.mxu1 %v6965_v10 }
  0x41   :  { %6255 = vmatmul.mubr.msk.f32.vlgmr.msra.gmra.mrb[10].mxu0 %vm88_vm0, %v7145_v23 }
  0x42   :  { %6266 = vmatmul.mubr.msk.f32.vlgmr.msra.gmra.mrb[10].mxu1 %vm88_vm0, %v7145_v23  ;;  %6270 = vmatprep.mubr.msk.f32.mxu0 %vm6966_vm1, %v6965_v10 }
  0x43   :  { %6285 = vmatprep.mubr.msk.f32.mxu1 %vm6966_vm1, %v6965_v10 }
  0xec   :  { %v6146_v12 = vpop.f32.mrb[0].mxu0 }
  0xed   :  { %v161_v13 = vpop.f32.mrb[1].mxu0  ;;  %v6157_v14 = vpop.f32.mrb[0].mxu1 }
  0xee   :  { %v241_v15 = vpop.f32.mrb[1].mxu1 }
  0xf4   :  { %v6168_v16 = vpop.f32.mrb[2].mxu0 }
  0xf5   :  { %v321_v17 = vpop.f32.mrb[3].mxu0  ;;  %v6179_v18 = vpop.f32.mrb[2].mxu1 }
  0xf6   :  { %v401_v19 = vpop.f32.mrb[3].mxu1 }
  0xfc   :  { %v6190_v20 = vpop.f32.mrb[4].mxu0 }
  0xfd   :  { %v6201_v21 = vpop.f32.mrb[4].mxu1  ;;  %v480_v22 = vpop.f32.mrb[5].mxu0 }
  0xfe   :  { %6284 = vmatpush3.xpose.msk.msra.mxu1 %vm1048_vm2, %v6201_v21  ;;  %6269 = vmatpush3.xpose.msk.msra.mxu0 %vm1048_vm2, %v480_v22  ;;  %v560_v24 = vpop.f32.mrb[5].mxu1 }
  0xff   :  { %6273 = vmatprep.subr.mxu0 %v6965_v10  ;;  %6293 = vmatprep.subr.mxu1 %v6965_v10 }
 0x101   :  { %6286 = vmatmul.mubr.msk.f32.vlgmr.msra.gmra.mrb[12].mxu1 %vm1048_vm2, %v6157_v14  ;;  %6271 = vmatmul.mubr.msk.f32.vlgmr.msra.gmra.mrb[12].mxu0 %vm1048_vm2, %v161_v13 }
 0x102   :  { %6274 = vmatpush3.xpose.msk.msra.mxu0 %vm1048_vm2, %v6190_v20  ;;  %6275 = vmatprep.mubr.msk.f32.mxu0 %vm6966_vm1, %v6965_v10 }
 0x103   :  { %6278 = vmatprep.subr.mxu0 %v6965_v10  ;;  %6295 = vmatprep.mubr.msk.f32.mxu1 %vm6966_vm1, %v6965_v10 }
 0x104   :  { %v6212_v25 = vpop.f32.mrb[6].mxu0 }
 0x105   :  { %6276 = vmatmul.mubr.msk.f32.vlgmr.msra.gmra.mrb[14].mxu0 %vm1048_vm2, %v6146_v12  ;;  %6294 = vmatpush3.xpose.msk.msra.mxu1 %vm1048_vm2, %v6212_v25  ;;  %v6223_v26 = vpop.f32.mrb[6].mxu1  ;;  %v640_v27 = vpop.f32.mrb[7].mxu0 }
 0x106   :  { %6279 = vmatpush3.xpose.msk.msra.mxu0 %vm1048_vm2, %v560_v24  ;;  %6280 = vmatprep.mubr.msk.f32.mxu0 %vm6966_vm1, %v6965_v10  ;;  %v720_v28 = vpop.f32.mrb[7].mxu1 }
 0x107   :  { %6303 = vmatprep.subr.mxu1 %v6965_v10  ;;  %6288 = vmatprep.subr.mxu0 %v6965_v10 }
 0x108   :  { %6296 = vmatmul.mubr.msk.f32.vlgmr.msra.gmra.mrb[14].mxu1 %vm1048_vm2, %v6168_v16 }
 0x109   :  { %6281 = vmatmul.mubr.msk.f32.vlgmr.msra.gmra.mrb[16].mxu0 %vm1048_vm2, %v241_v15  ;;  %6304 = vmatpush3.xpose.msk.msra.mxu1 %vm1048_vm2, %v6223_v26 }
 0x10a   :  { %6289 = vmatpush3.xpose.msk.msra.mxu0 %vm1048_vm2, %v640_v27  ;;  %6305 = vmatprep.mubr.msk.f32.mxu1 %vm6966_vm1, %v6965_v10 }
 0x10b   :  { %6290 = vmatprep.mubr.msk.f32.mxu0 %vm6966_vm1, %v6965_v10  ;;  %6298 = vmatprep.subr.mxu0 %v6965_v10 }
 0x10c   :  { %6306 = vmatmul.mubr.msk.f32.vlgmr.msra.gmra.mrb[16].mxu1 %vm1048_vm2, %v6179_v18  ;;  %6313 = vmatprep.subr.mxu1 %v6965_v10  ;;  %v6234_v31 = vpop.f32.mrb[8].mxu0 }
 0x10d   :  { %6291 = vmatmul.mubr.msk.f32.vlgmr.msra.gmra.mrb[18].mxu0 %vm1048_vm2, %v321_v17  ;;  %v7324_v29 = vpop.f32.mrb[8].mxu1  ;;  %6315 = vmatprep.mubr.msk.f32.mxu1 %vm6966_vm1, %v6965_v10  ;;  %v799_v32 = vpop.f32.mrb[9].mxu0  ;;  %v83_v17 = vld [vmem:[%s7962_s25 + $0x38] sm:$0xff]  ;;  %s7963_s25 = sld [smem:[#allocation5_spill]] }
 0x10e   :  { %6299 = vmatpush3.xpose.msk.msra.mxu0 %vm1048_vm2, %v720_v28  ;;  %6300 = vmatprep.mubr.msk.f32.mxu0 %vm6966_vm1, %v6965_v10  ;;  %v7331_v30 = vpop.f32.mrb[9].mxu1 }
 0x10f   :  { %6308 = vmatprep.subr.mxu0 %v6965_v10  ;;  %6314 = vmatpush3.msra.mxu1 %v6234_v31 }
 0x110   :  { %6323 = vmatprep.subr.mxu1 %v6965_v10 }
 0x111   :  { %6301 = vmatmul.mubr.msk.f32.vlgmr.msra.gmra.mrb[20].mxu0 %vm1048_vm2, %v401_v19 }
 0x112   :  { %6310 = vmatprep.mubr.msk.f32.mxu0 %vm6966_vm1, %v6965_v10  ;;  %6309 = vmatpush3.msra.mxu0 %v799_v32 }
 0x113   :  { %6318 = vmatprep.subr.mxu0 %v6965_v10 }
 0x114   :  { %v7339_v33 = vpop.f32.mrb[10].mxu0 }
 0x115   :  { %v7341_v34 = vpop.f32.mrb[10].mxu1  ;;  %v7343_v35 = vpop.f32.mrb[11].mxu0 }
 0x116   :  { %v7345_v36 = vpop.f32.mrb[11].mxu1 }
 0x1d4   :  { %v1349_v37 = vpop.f32.mrb[12].mxu1  ;;  %v1121_v38 = vpop.f32.mrb[12].mxu0 }
 0x1d5   :  { %v1657_v40 = vmul.f32 0.35355338, %v1121_v38  ;;  %v6287_v41 = vpop.f32.mrb[13].mxu1  ;;  %v6272_v42 = vpop.f32.mrb[13].mxu0  ;;  %v1660_v51 = vmul.f32 0.35355338, %v1349_v37 }
 0x1d7   :  { %v1665_v43 = vadd.f32 %v1657_v40, %v76_v39  ;;  %v1668_v63 = vadd.f32 %v1660_v51, %v79_v58 }
 0x1d8   :  { %v1197_v44 = vpop.f32.mrb[14].mxu0 }
 0x1d9   :  { %v1658_v46 = vmul.f32 0.35355338, %v1197_v44  ;;  %v6277_v47 = vpop.f32.mrb[15].mxu0  ;;  %v1673_v48 = vsel %vm1048_vm2, %v1665_v43, -inf  ;;  %v1682_v8 = vsel %vm1048_vm2, %v1668_v63, -inf }
 0x1da   :  { %1674 = vmax.xlane.f32.xlu0 %v1673_v48 }
 0x1db   :  { %v1501_v49 = vpop.f32.mrb[14].mxu1  ;;  %v1666_v50 = vadd.f32 %v1658_v46, %v77_v45 }
 0x1dc   :  { %v1273_v52 = vpop.f32.mrb[16].mxu0  ;;  %v6297_v53 = vpop.f32.mrb[15].mxu1  ;;  %v1662_v1 = vmul.f32 0.35355338, %v1501_v49 }
 0x1dd   :  { %v1659_v55 = vmul.f32 0.35355338, %v1273_v52  ;;  %v6282_v56 = vpop.f32.mrb[17].mxu0  ;;  %v1676_v57 = vsel %vm1048_vm2, %v1666_v50, -inf }
 0x1de   :  { %1677 = vmax.xlane.f32.xlu0 %v1676_v57  ;;  %v1670_v16 = vadd.f32 %v1662_v1, %v81_v5 }
 0x1df   :  { %v1653_v59 = vpop.f32.mrb[16].mxu1  ;;  %v1667_v60 = vadd.f32 %v1659_v55, %v78_v54 }
 0x1e0   :  { %v1425_v61 = vpop.f32.mrb[18].mxu0  ;;  %v6307_v62 = vpop.f32.mrb[17].mxu1  ;;  %v1664_v12 = vmul.f32 0.35355338, %v1653_v59  ;;  %v1688_v19 = vsel %vm1048_vm2, %v1670_v16, -inf }
 0x1e1   :  { %v1661_v2 = vmul.f32 0.35355338, %v1425_v61  ;;  %v6292_v3 = vpop.f32.mrb[19].mxu0  ;;  %v1679_v4 = vsel %vm1048_vm2, %v1667_v60, -inf }
 0x1e2   :  { %1680 = vmax.xlane.f32.xlu1 %v1679_v4  ;;  %v1672_v21 = vadd.f32 %v1664_v12, %v83_v17 }
 0x1e3   :  { %v1669_v6 = vadd.f32 %v1661_v2, %v80_v0 }
 0x1e4   :  { %v1577_v7 = vpop.f32.mrb[20].mxu0  ;;  %v1694_v22 = vsel %vm1048_vm2, %v1672_v21, -inf }
 0x1e5   :  { %v1663_v13 = vmul.f32 0.35355338, %v1577_v7  ;;  %v6302_v14 = vpop.f32.mrb[21].mxu0  ;;  %v1685_v15 = vsel %vm1048_vm2, %v1669_v6, -inf }
 0x1e6   :  { %1683 = vmax.xlane.f32.xlu1 %v1682_v8  ;;  %1686 = vmax.xlane.f32.xlu0 %v1685_v15 }
 0x1e7   :  { %v1671_v18 = vadd.f32 %v1663_v13, %v82_v9 }
 0x1e9   :  { %v1691_v20 = vsel %vm1048_vm2, %v1671_v18, -inf }
 0x1ea   :  { %1689 = vmax.xlane.f32.xlu1 %v1688_v19  ;;  %1692 = vmax.xlane.f32.xlu0 %v1691_v20 }
 0x1ee   :  { %1695 = vmax.xlane.f32.xlu1 %v1694_v22 }
 0x267   :  { %v1675_v24 = vpop.xlane.xlu0 %1674 }
 0x268   :  { %v1697_v25 = vsub.f32 %v1665_v43, %v1675_v24 }
 0x26a   :  { %v1705_v26 = vmul.f32 1.442695, %v1697_v25 }
 0x26b   :  { %v1678_v27 = vpop.xlane.xlu0 %1677 }
 0x26c   :  { %6863 = vpow2.f32 %v1705_v26  ;;  %v1698_v28 = vsub.f32 %v1666_v50, %v1678_v27 }
 0x26e   :  { %v1707_v31 = vmul.f32 1.442695, %v1698_v28 }
 0x26f   :  { %v1681_v32 = vpop.xlane.xlu1 %1680 }
 0x270   :  { %6865 = vpow2.f32 %v1707_v31  ;;  %v1699_v37 = vsub.f32 %v1667_v60, %v1681_v32  ;;  %v7423_v31 = vld [vmem:[%s7928_s7] sm:$0xff]  ;;  %v2736_v32 = vld [vmem:[%s7929_s8 + $0x8] sm:$0xff] }
 0x272   :  { %v1709_v38 = vmul.f32 1.442695, %v1699_v37  ;;  %v2737_v37 = vld [vmem:[%s7929_s8 + $0x10] sm:$0xff] }
 0x273   :  { %v1684_v39 = vpop.xlane.xlu1 %1683  ;;  %v1687_v40 = vpop.xlane.xlu0 %1686 }
 0x274   :  { %6867 = vpow2.f32 %v1709_v38  ;;  %v1700_v41 = vsub.f32 %v1668_v63, %v1684_v39  ;;  %v1701_v42 = vsub.f32 %v1669_v6, %v1687_v40  ;;  %v2738_v39 = vld [vmem:[%s7929_s8 + $0x18] sm:$0xff] }
 0x275   :  { %v6730_v40 = vpack.c.bf16 %v2738_v39, %v2737_v37  ;;  %v3061_v37 = vld [vmem:[%s7930_s9 + $0x8] sm:$0xff]  ;;  %v3062_v39 = vld [vmem:[%s7930_s9 + $0x10] sm:$0xff] }
 0x276   :  { %v6864_v44 = vpop.eup %6863  ;;  %v1711_v45 = vmul.f32 1.442695, %v1700_v41  ;;  %v1713_v46 = vmul.f32 1.442695, %v1701_v42  ;;  %v7441_v41 = vld [vmem:[%s7963_s25] sm:$0xff] }
 0x277   :  { %v1690_v47 = vpop.xlane.xlu1 %1689  ;;  %v1693_v48 = vpop.xlane.xlu0 %1692  ;;  %v1721_v43 = vsel %vm1048_vm2, %v6864_v44, 0.0  ;;  %v5777_v42 = vld [vmem:[%s7929_s8 + $0x20] sm:$0xff] }
 0x278   :  { %6869 = vpow2.f32 %v1711_v45  ;;  %v1702_v49 = vsub.f32 %v1670_v16, %v1690_v47  ;;  %v1703_v50 = vsub.f32 %v1671_v18, %v1693_v48  ;;  %1722 = vadd.xlane.f32.xlu0 %v1721_v43  ;;  %v5779_v47 = vld [vmem:[%s7929_s8 + $0x30] sm:$0xff]  ;;  %v5780_v48 = vld [vmem:[%s7929_s8 + $0x38] sm:$0xff] }
 0x279   :  { %6871 = vpow2.f32 %v1713_v46  ;;  %v7454_v46 = vld [vmem:[%s7963_s25 + $0x8] sm:$0xff]  ;;  %v6738_v43 = vpack.c.bf16 %v5780_v48, %v5779_v47  ;;  %v5805_v47 = vld [vmem:[%s7930_s9 + $0x50] sm:$0xff]  ;;  %v5806_v48 = vld [vmem:[%s7930_s9 + $0x58] sm:$0xff] }
 0x27a   :  { %v6866_v51 = vpop.eup %6865  ;;  %v1715_v52 = vmul.f32 1.442695, %v1702_v49  ;;  %v1717_v53 = vmul.f32 1.442695, %v1703_v50  ;;  %v5789_v49 = vld [vmem:[%s7929_s8 + $0x60] sm:$0xff]  ;;  %v5790_v50 = vld [vmem:[%s7929_s8 + $0x68] sm:$0xff] }
 0x27b   :  { %v1696_v54 = vpop.xlane.xlu1 %1695  ;;  %v1724_v55 = vsel %vm1048_vm2, %v6866_v51, 0.0 }
 0x27c   :  { %6873 = vpow2.f32 %v1715_v52  ;;  %v1704_v56 = vsub.f32 %v1672_v21, %v1696_v54  ;;  %1725 = vadd.xlane.f32.xlu1 %v1724_v55  ;;  %v5791_v52 = vld [vmem:[%s7929_s8 + $0x70] sm:$0xff]  ;;  %v5797_v55 = vld [vmem:[%s7930_s9 + $0x20] sm:$0xff] }
 0x27d   :  { %6875 = vpow2.f32 %v1717_v53  ;;  %v5792_v53 = vld [vmem:[%s7929_s8 + $0x78] sm:$0xff] }
 0x27e   :  { %v6868_v57 = vpop.eup %6867  ;;  %v1719_v58 = vmul.f32 1.442695, %v1704_v56  ;;  %v6754_v54 = vpack.c.bf16 %v5792_v53, %v5791_v52  ;;  %v5798_v56 = vld [vmem:[%s7930_s9 + $0x28] sm:$0xff]  ;;  %v3382_v52 = vld [vmem:[%s7931_s10 + $0x18] sm:$0xff] }
 0x27f   :  { %v1727_v59 = vsel %vm1048_vm2, %v6868_v57, 0.0 }
 0x280   :  { %6877 = vpow2.f32 %v1719_v58  ;;  %1728 = vadd.xlane.f32.xlu0 %v1727_v59  ;;  %v5799_v58 = vld [vmem:[%s7930_s9 + $0x30] sm:$0xff]  ;;  %v5800_v59 = vld [vmem:[%s7930_s9 + $0x38] sm:$0xff] }
 0x282   :  { %v6870_v60 = vpop.eup %6869 }
 0x283   :  { %v6872_v61 = vpop.eup %6871  ;;  %v1730_v62 = vsel %vm1048_vm2, %v6870_v60, 0.0 }
 0x284   :  { %1731 = vadd.xlane.f32.xlu1 %v1730_v62  ;;  %v1733_v63 = vsel %vm1048_vm2, %v6872_v61, 0.0  ;;  %v5810_v62 = vld [vmem:[%s7930_s9 + $0x68] sm:$0xff] }
 0x285   :  { %1734 = vadd.xlane.f32.xlu0 %v1733_v63 }
 0x286   :  { %v6874_v0 = vpop.eup %6873 }
 0x287   :  { %v6876_v1 = vpop.eup %6875  ;;  %v1736_v2 = vsel %vm1048_vm2, %v6874_v0, 0.0 }
 0x288   :  { %1737 = vadd.xlane.f32.xlu1 %v1736_v2  ;;  %v1739_v3 = vsel %vm1048_vm2, %v6876_v1, 0.0 }
 0x289   :  { %1740 = vadd.xlane.f32.xlu0 %v1739_v3  ;;  %v5817_v3 = vld [vmem:[%s7931_s10 + $0x20] sm:$0xff] }
 0x28a   :  { %v6878_v4 = vpop.eup %6877 }
 0x28b   :  { %v1742_v5 = vsel %vm1048_vm2, %v6878_v4, 0.0 }
 0x28c   :  { %1743 = vadd.xlane.f32.xlu1 %v1742_v5 }
 0x305   :  { %v1723_v6 = vpop.xlane.xlu0 %1722 }
 0x306   :  { %6879 = vrcp.f32 %v1723_v6  ;;  %v5819_v6 = vld [vmem:[%s7931_s10 + $0x30] sm:$0xff] }
 0x309   :  { %v1726_v7 = vpop.xlane.xlu1 %1725 }
 0x30a   :  { %6881 = vrcp.f32 %v1726_v7  ;;  %v5820_v7 = vld [vmem:[%s7931_s10 + $0x38] sm:$0xff] }
 0x30d   :  { %v1729_v8 = vpop.xlane.xlu0 %1728 }
 0x30e   :  { %6883 = vrcp.f32 %v1729_v8  ;;  %v6802_v8 = vpack.c.bf16 %v5820_v7, %v5819_v6  ;;  %v7649_v6 = vld [vmem:[%s7959_s0 + $0x8] sm:$0xff] }
 0x310   :  { %v6880_v9 = vpop.eup %6879 }
 0x311   :  { %v1753_v12 = vmul.f32 %v6880_v9, %v6864_v44  ;;  %v1732_v13 = vpop.xlane.xlu1 %1731  ;;  %v5778_v44 = vld [vmem:[%s7929_s8 + $0x28] sm:$0xff] }
 0x312   :  { %6885 = vrcp.f32 %v1732_v13  ;;  %v1735_v14 = vpop.xlane.xlu0 %1734  ;;  %v6734_v45 = vpack.c.bf16 %v5778_v44, %v5777_v42  ;;  %v5803_v44 = vld [vmem:[%s7930_s9 + $0x40] sm:$0xff] }
 0x313   :  { %6887 = vrcp.f32 %v1735_v14  ;;  %6311 = vmatmul.mubr.msk.f32.vlgmr.msra.gmra.mrb[22].mxu0 %vm1048_vm2, %v1753_v12 }
 0x314   :  { %v6882_v15 = vpop.eup %6881  ;;  %6319 = vmatpush3.msra.mxu0 %v7331_v30  ;;  %6320 = vmatprep.mubr.msk.f32.mxu0 %vm6966_vm1, %v6965_v10 }
 0x315   :  { %v1754_v16 = vmul.f32 %v6882_v15, %v6866_v51  ;;  %v1738_v17 = vpop.xlane.xlu1 %1737  ;;  %6328 = vmatprep.subr.mxu0 %v6965_v10  ;;  %v6750_v51 = vpack.c.bf16 %v5790_v50, %v5789_v49  ;;  %v7602_v49 = vld [vmem:[%s7959_s0] sm:$0xff] }
 0x316   :  { %6889 = vrcp.f32 %v1738_v17  ;;  %v1741_v18 = vpop.xlane.xlu0 %1740 }
 0x317   :  { %6891 = vrcp.f32 %v1741_v18  ;;  %6316 = vmatmul.mubr.msk.f32.vlgmr.msra.gmra.mrb[18].mxu1 %vm1048_vm2, %v1754_v16  ;;  %v5767_v18 = vld [vmem:[%s7928_s7 + $0x10] sm:$0xff] }
 0x318   :  { %v6884_v19 = vpop.eup %6883  ;;  %6324 = vmatpush3.msra.mxu1 %v7324_v29  ;;  %6325 = vmatprep.mubr.msk.f32.mxu1 %vm6966_vm1, %v6965_v10 }
 0x319   :  { %v1755_v20 = vmul.f32 %v6884_v19, %v6868_v57  ;;  %v1744_v30 = vpop.xlane.xlu1 %1743  ;;  %6333 = vmatprep.subr.mxu1 %v6965_v10  ;;  %v6766_v57 = vpack.c.bf16 %v5798_v56, %v5797_v55  ;;  %v5829_v56 = vld [vmem:[%s7931_s10 + $0x60] sm:$0xff] }
 0x31a   :  { %6893 = vrcp.f32 %v1744_v30 }
 0x31b   :  { %6321 = vmatmul.mubr.msk.f32.vlgmr.msra.gmra.mrb[24].mxu0 %vm1048_vm2, %v1755_v20 }
 0x31c   :  { %v6886_v21 = vpop.eup %6885  ;;  %6329 = vmatpush3.msra.mxu0 %v7343_v35  ;;  %6330 = vmatprep.mubr.msk.f32.mxu0 %vm6966_vm1, %v6965_v10 }
 0x31d   :  { %v6888_v22 = vpop.eup %6887  ;;  %v1756_v24 = vmul.f32 %v6886_v21, %v6870_v60  ;;  %6338 = vmatprep.subr.mxu0 %v6965_v10  ;;  %v6770_v60 = vpack.c.bf16 %v5800_v59, %v5799_v58  ;;  %v5823_v59 = vld [vmem:[%s7931_s10 + $0x40] sm:$0xff] }
 0x31e   :  { %v1757_v29 = vmul.f32 %v6888_v22, %v6872_v61  ;;  %v5809_v61 = vld [vmem:[%s7930_s9 + $0x60] sm:$0xff] }
 0x31f   :  { %6326 = vmatmul.mubr.msk.f32.vlgmr.msra.gmra.mrb[20].mxu1 %vm1048_vm2, %v1756_v24  ;;  %v6782_v63 = vpack.c.bf16 %v5810_v62, %v5809_v61  ;;  %v5832_v62 = vld [vmem:[%s7931_s10 + $0x78] sm:$0xff] }
 0x320   :  { %v6890_v25 = vpop.eup %6889  ;;  %6331 = vmatmul.mubr.msk.f32.vlgmr.msra.gmra.mrb[26].mxu0 %vm1048_vm2, %v1757_v29  ;;  %6334 = vmatpush3.msra.mxu1 %v7339_v33 }
 0x321   :  { %v6892_v26 = vpop.eup %6891  ;;  %v1758_v27 = vmul.f32 %v6890_v25, %v6874_v0  ;;  %6339 = vmatpush3.msra.mxu0 %v7345_v36  ;;  %6335 = vmatprep.mubr.msk.f32.mxu1 %vm6966_vm1, %v6965_v10  ;;  %v5762_v36 = vld [vmem:[%s7928_s7 + $0x8] sm:$0xff]  ;;  %v5811_v0 = vld [vmem:[%s7930_s9 + $0x70] sm:$0xff] }
 0x322   :  { %v1759_v35 = vmul.f32 %v6892_v26, %v6876_v1  ;;  %6340 = vmatprep.mubr.msk.f32.mxu0 %vm6966_vm1, %v6965_v10  ;;  %6343 = vmatprep.subr.mxu1 %v6965_v10  ;;  %v5812_v1 = vld [vmem:[%s7930_s9 + $0x78] sm:$0xff] }
 0x323   :  { %6336 = vmatmul.mubr.msk.f32.vlgmr.msra.gmra.mrb[22].mxu1 %vm1048_vm2, %v1758_v27  ;;  %6348 = vmatprep.subr.mxu0 %v5762_v36  ;;  %v6786_v2 = vpack.c.bf16 %v5812_v1, %v5811_v0  ;;  %v5770_v26 = vld [vmem:[%s7928_s7 + $0x18] sm:$0xff] }
 0x324   :  { %v6894_v28 = vpop.eup %6893  ;;  %6341 = vmatmul.mubr.msk.f32.vlgmr.msra.gmra.mrb[28].mxu0 %vm1048_vm2, %v1759_v35  ;;  %6344 = vmatpush3.msra.mxu1 %v7341_v34  ;;  %v2735_v34 = vld [vmem:[%s7929_s8] sm:$0xff] }
 0x325   :  { %v1760_v33 = vmul.f32 %v6894_v28, %v6878_v4  ;;  %6345 = vmatprep.mubr.msk.f32.mxu1 %vm6966_vm1, %v6965_v10  ;;  %6349 = vmatpush3.msra.mxu0 %v5762_v36  ;;  %v6726_v38 = vpack.c.bf16 %v2736_v32, %v2735_v34  ;;  %v5818_v4 = vld [vmem:[%s7931_s10 + $0x28] sm:$0xff]  ;;  %v5783_v35 = vld [vmem:[%s7929_s8 + $0x40] sm:$0xff]  ;;  %v5785_v36 = vld [vmem:[%s7929_s8 + $0x50] sm:$0xff] }
 0x326   :  { %6353 = vmatprep.subr.mxu0 %v7423_v31  ;;  %v6798_v5 = vpack.c.bf16 %v5818_v4, %v5817_v3  ;;  %v5784_v28 = vld [vmem:[%s7929_s8 + $0x48] sm:$0xff]  ;;  %v3060_v32 = vld [vmem:[%s7930_s9] sm:$0xff]  ;;  %v5826_v3 = vld [vmem:[%s7931_s10 + $0x58] sm:$0xff] }
 0x327   :  { %6346 = vmatmul.mubr.msk.f32.vlgmr.msra.gmra.mrb[24].mxu1 %vm1048_vm2, %v1760_v33  ;;  %6727 = vmatprep.subr.bf16.mxu1 %v6726_v38  ;;  %v6742_v33 = vpack.c.bf16 %v5784_v28, %v5783_v35 }
 0x328   :  { %6729 = vmatpush3.bf16.msra.mxu1 %v6726_v38  ;;  %6376 = vmatprep.mubr.msk.f32.mxu1 %vm88_vm0, %v7441_v41  ;;  %v6758_v38 = vpack.c.bf16 %v3061_v37, %v3060_v32  ;;  %v5851_v32 = vld [vmem:[%s7964_s1] ss:$0 sm:$0xff] }
 0x329   :  { %6731 = vmatprep.subr.bf16.mxu1 %v6730_v40 }
 0x32c   :  { %6733 = vmatpush3.bf16.msra.mxu1 %v6730_v40  ;;  %v3063_v40 = vld [vmem:[%s7930_s9 + $0x18] sm:$0xff] }
 0x32d   :  { %6735 = vmatprep.subr.bf16.mxu1 %v6734_v45  ;;  %v6762_v42 = vpack.c.bf16 %v3063_v40, %v3062_v39 }
 0x32f   :  { %6377 = vmatmul.mubr.msk.f32.vlgmr.msra.gmra.mrb[26].mxu1 %vm88_vm0, %v7454_v46 }
 0x330   :  { %6737 = vmatpush3.bf16.msra.mxu1 %v6734_v45  ;;  %6387 = vmatprep.mubr.msk.f32.mxu1 %vm88_vm0, %v7441_v41 }
 0x331   :  { %6739 = vmatprep.subr.bf16.mxu1 %v6738_v43 }
 0x334   :  { %6741 = vmatpush3.bf16.msra.mxu1 %v6738_v43  ;;  %v6778_v43 = vpack.c.bf16 %v5806_v48, %v5805_v47 }
 0x335   :  { %6751 = vmatprep.subr.bf16.mxu1 %v6750_v51 }
 0x337   :  { %6388 = vmatmul.mubr.msk.f32.vlgmr.msra.gmra.mrb[28].mxu1 %vm88_vm0, %v7454_v46 }
 0x338   :  { %6753 = vmatpush3.bf16.msra.mxu1 %v6750_v51  ;;  %6409 = vmatprep.mubr.msk.f32.mxu1 %vm88_vm0, %v7441_v41  ;;  %v3381_v51 = vld [vmem:[%s7931_s10 + $0x10] sm:$0xff] }
 0x339   :  { %6755 = vmatprep.subr.bf16.mxu1 %v6754_v54  ;;  %v6794_v53 = vpack.c.bf16 %v3382_v52, %v3381_v51 }
 0x33c   :  { %6757 = vmatpush3.bf16.msra.mxu1 %v6754_v54 }
 0x33d   :  { %6767 = vmatprep.subr.bf16.mxu1 %v6766_v57 }
 0x33f   :  { %6410 = vmatmul.mubr.msk.f32.vlgmr.msra.gmra.mrb[30].mxu1 %vm88_vm0, %v7454_v46 }
 0x340   :  { %6769 = vmatpush3.bf16.msra.mxu1 %v6766_v57  ;;  %6431 = vmatprep.mubr.msk.f32.mxu1 %vm88_vm0, %v7112_v11  ;;  %v5830_v57 = vld [vmem:[%s7931_s10 + $0x68] sm:$0xff] }
 0x341   :  { %6771 = vmatprep.subr.bf16.mxu1 %v6770_v60  ;;  %v6814_v58 = vpack.c.bf16 %v5830_v57, %v5829_v56 }
 0x344   :  { %6773 = vmatpush3.bf16.msra.mxu1 %v6770_v60  ;;  %v5831_v60 = vld [vmem:[%s7931_s10 + $0x70] sm:$0xff] }
 0x345   :  { %6783 = vmatprep.subr.bf16.mxu1 %v6782_v63  ;;  %v6818_v0 = vpack.c.bf16 %v5832_v62, %v5831_v60 }
 0x347   :  { %6432 = vmatmul.mubr.msk.f32.vlgmr.msra.gmra.mrb[32].mxu1 %vm88_vm0, %v7145_v23 }
 0x348   :  { %6453 = vmatprep.mubr.msk.f32.mxu1 %vm88_vm0, %v7112_v11  ;;  %6785 = vmatpush3.bf16.msra.mxu1 %v6782_v63 }
 0x349   :  { %6787 = vmatprep.subr.bf16.mxu1 %v6786_v2 }
 0x34c   :  { %6789 = vmatpush3.bf16.msra.mxu1 %v6786_v2  ;;  %v5825_v2 = vld [vmem:[%s7931_s10 + $0x50] sm:$0xff] }
 0x34d   :  { %6799 = vmatprep.subr.bf16.mxu1 %v6798_v5  ;;  %v6810_v4 = vpack.c.bf16 %v5826_v3, %v5825_v2  ;;  %v5857_v2 = vld [vmem:[%s7964_s1 + $0x6] ss:$0 sm:$0xff] }
 0x34f   :  { %6454 = vmatmul.mubr.msk.f32.vlgmr.msra.gmra.mrb[34].mxu1 %vm88_vm0, %v7145_v23 }
 0x350   :  { %6801 = vmatpush3.bf16.msra.mxu1 %v6798_v5  ;;  %6475 = vmatprep.mubr.msk.f32.mxu1 %vm88_vm0, %v7112_v11 }
 0x351   :  { %6803 = vmatprep.subr.bf16.mxu1 %v6802_v8 }
 0x354   :  { %6805 = vmatpush3.bf16.msra.mxu1 %v6802_v8 }
 0x355   :  { %6815 = vmatprep.subr.bf16.mxu1 %v6814_v58 }
 0x357   :  { %6476 = vmatmul.mubr.msk.f32.vlgmr.msra.gmra.mrb[36].mxu1 %vm88_vm0, %v7145_v23 }
 0x358   :  { %6497 = vmatprep.mubr.msk.f32.mxu1 %vm88_vm0, %v7112_v11  ;;  %6817 = vmatpush3.bf16.msra.mxu1 %v6814_v58 }
 0x359   :  { %6819 = vmatprep.subr.bf16.mxu1 %v6818_v0 }
 0x35c   :  { %6821 = vmatpush3.bf16.msra.mxu1 %v6818_v0 }
 0x35d   :  { %6505 = vmatprep.subr.mxu1 %v6965_v10 }
 0x35f   :  { %6498 = vmatmul.mubr.msk.f32.vlgmr.msra.gmra.mrb[38].mxu1 %vm88_vm0, %v7649_v6 }
 0x360   :  { %6507 = vmatprep.mubr.msk.f32.mxu1 %vm6966_vm1, %v6965_v10 }
 0x3e6   :  { %v1830_v9 = vpop.f32.mrb[22].mxu0 }
 0x3e7   :  { %v6312_v12 = vpop.f32.mrb[23].mxu0 }
 0x3ea   :  { %v1903_v13 = vpop.f32.mrb[18].mxu1 }
 0x3eb   :  { %v6317_v14 = vpop.f32.mrb[19].mxu1 }
 0x3ee   :  { %v1976_v15 = vpop.f32.mrb[24].mxu0 }
 0x3ef   :  { %v6322_v16 = vpop.f32.mrb[25].mxu0  ;;  %6350 = vmatprep.mubr.msk.f32.mxu0 %vm1048_vm2, %v1976_v15 }
 0x3f2   :  { %v2049_v17 = vpop.f32.mrb[20].mxu1 }
 0x3f3   :  { %v2122_v19 = vpop.f32.mrb[26].mxu0  ;;  %v6327_v20 = vpop.f32.mrb[21].mxu1  ;;  %6351 = vmatmul.mubr.msk.f32.vlgmr.msra.gmra.mrb[30].mxu0 %vm1048_vm2, %v2049_v17 }
 0x3f4   :  { %v6332_v30 = vpop.f32.mrb[27].mxu0  ;;  %6354 = vmatpush3.msra.mxu0 %v7423_v31  ;;  %6355 = vmatprep.mubr.msk.f32.mxu0 %vm1048_vm2, %v1830_v9  ;;  %v5786_v31 = vld [vmem:[%s7929_s8 + $0x58] sm:$0xff]  ;;  %s6967_s8 = smov [#allocation2]  }
 0x3f5   :  { %6358 = vmatprep.subr.mxu0 %v5767_v18  ;;  %v6746_v34 = vpack.c.bf16 %v5786_v31, %v5785_v36  ;;  %s5667_s28 = sshll.u32 %s6967_s8, 4  ;;  %s5668_s28 = int_to_ptr.vmem [resolvable:$true] %s5667_s28 }
 0x3f6   :  { %v2195_v21 = vpop.f32.mrb[22].mxu1  ;;  %s6941_s30 = scalar_lea.vmem %s5668_s28, 256  ;;  %p6946_p1 = scmp.lt.s32.totalorder %s5668_s28, %s5668_s28 }
 0x3f7   :  { %v2268_v22 = vpop.f32.mrb[28].mxu0  ;;  %v6337_v24 = vpop.f32.mrb[23].mxu1  ;;  %p6942_p0 = scmp.ne.s32.totalorder %s5668_s28, %s6941_s30  ;;  %p6947_p2 = scmp.lt.s32.totalorder %s6941_s30, %s6941_s30 }
 0x3f8   :  { %v6342_v29 = vpop.f32.mrb[29].mxu0 }
 0x3f9   :  { %p6948_p3 = por %p6947_p2, %p6946_p1 }
 0x3fa   :  { %v2341_v25 = vpop.f32.mrb[24].mxu1 }
 0x3fb   :  { %v6347_v27 = vpop.f32.mrb[25].mxu1  ;;  %6356 = vmatmul.mubr.msk.f32.vlgmr.msra.gmra.mrb[30].mxu0 %vm1048_vm2, %v1903_v13  ;;  %p6949_p4 = pnand %p6948_p3, %p6942_p0 }
 0x3fc   :  { %6359 = vmatpush3.msra.mxu0 %v5767_v18  ;;  %6360 = vmatprep.mubr.msk.f32.mxu0 %vm1048_vm2, %v2122_v19 }
 0x3fd   :  { %6363 = vmatprep.subr.mxu0 %v5770_v26 }
 0x402   :  { %v6378_v54 = vpop.f32.mrb[26].mxu1 }
 0x403   :  { %6361 = vmatmul.mubr.msk.f32.vlgmr.msra.gmra.mrb[30].mxu0 %vm1048_vm2, %v2195_v21  ;;  %v2811_v55 = vpop.f32.mrb[27].mxu1 }
 0x404   :  { %6364 = vmatpush3.msra.mxu0 %v5770_v26  ;;  %6365 = vmatprep.mubr.msk.f32.mxu0 %vm1048_vm2, %v2268_v22 }
 0x405   :  { %6743 = vmatprep.subr.bf16.mxu0 %v6742_v33 }
 0x40a   :  { %v6389_v63 = vpop.f32.mrb[28].mxu1 }
 0x40b   :  { %6366 = vmatmul.mubr.msk.f32.vlgmr.msra.gmra.mrb[30].mxu0 %vm1048_vm2, %v2341_v25  ;;  %v2891_v1 = vpop.f32.mrb[29].mxu1 }
 0x40c   :  { %6745 = vmatpush3.bf16.msra.mxu0 %v6742_v33  ;;  %6398 = vmatprep.mubr.msk.f32.mxu0 %vm88_vm0, %v7441_v41  ;;  %v5804_v41 = vld [vmem:[%s7930_s9 + $0x48] sm:$0xff]  ;;  %v5852_v33 = vld [vmem:[%s7964_s1 + $0x1] ss:$0 sm:$0xff] }
 0x40d   :  { %6747 = vmatprep.subr.bf16.mxu0 %v6746_v34  ;;  %v6774_v45 = vpack.c.bf16 %v5804_v41, %v5803_v44  ;;  %v5854_v44 = vld [vmem:[%s7964_s1 + $0x3] ss:$0 sm:$0xff]  ;;  %v5853_v41 = vld [vmem:[%s7964_s1 + $0x2] ss:$0 sm:$0xff] }
 0x410   :  { %6749 = vmatpush3.bf16.msra.mxu0 %v6746_v34 }
 0x411   :  { %6759 = vmatprep.subr.bf16.mxu0 %v6758_v38 }
 0x412   :  { %v6411_v5 = vpop.f32.mrb[30].mxu1 }
 0x413   :  { %6399 = vmatmul.mubr.msk.f32.vlgmr.msra.gmra.mrb[32].mxu0 %vm88_vm0, %v7454_v46  ;;  %v3379_v46 = vld [vmem:[%s7931_s10] sm:$0xff]  ;;  %v3051_v7 = vpop.f32.mrb[31].mxu1 }
 0x414   :  { %6761 = vmatpush3.bf16.msra.mxu0 %v6758_v38  ;;  %6420 = vmatprep.mubr.msk.f32.mxu0 %vm88_vm0, %v7112_v11  ;;  %v3380_v11 = vld [vmem:[%s7931_s10 + $0x8] sm:$0xff] }
 0x415   :  { %6763 = vmatprep.subr.bf16.mxu0 %v6762_v42  ;;  %v6790_v50 = vpack.c.bf16 %v3380_v11, %v3379_v46 }
 0x418   :  { %6765 = vmatpush3.bf16.msra.mxu0 %v6762_v42 }
 0x419   :  { %6775 = vmatprep.subr.bf16.mxu0 %v6774_v45 }
 0x41a   :  { %v6433_v8 = vpop.f32.mrb[32].mxu1 }
 0x41b   :  { %6421 = vmatmul.mubr.msk.f32.vlgmr.msra.gmra.mrb[34].mxu0 %vm88_vm0, %v7145_v23  ;;  %v3210_v9 = vpop.f32.mrb[33].mxu1 }
 0x41c   :  { %6777 = vmatpush3.bf16.msra.mxu0 %v6774_v45  ;;  %6442 = vmatprep.mubr.msk.f32.mxu0 %vm88_vm0, %v7602_v49 }
 0x41d   :  { %6779 = vmatprep.subr.bf16.mxu0 %v6778_v43 }
 0x420   :  { %6781 = vmatpush3.bf16.msra.mxu0 %v6778_v43 }
 0x421   :  { %6791 = vmatprep.subr.bf16.mxu0 %v6790_v50 }
 0x422   :  { %v6455_v12 = vpop.f32.mrb[34].mxu1 }
 0x423   :  { %6443 = vmatmul.mubr.msk.f32.vlgmr.msra.gmra.mrb[36].mxu0 %vm88_vm0, %v7145_v23  ;;  %v3370_v13 = vpop.f32.mrb[35].mxu1 }
 0x424   :  { %6793 = vmatpush3.bf16.msra.mxu0 %v6790_v50  ;;  %6464 = vmatprep.mubr.msk.f32.mxu0 %vm88_vm0, %v7602_v49 }
 0x425   :  { %6795 = vmatprep.subr.bf16.mxu0 %v6794_v53 }
 0x428   :  { %6797 = vmatpush3.bf16.msra.mxu0 %v6794_v53 }
 0x42a   :  { %v7659_v14 = vpop.f32.mrb[36].mxu1 }
 0x42b   :  { %6465 = vmatmul.mubr.msk.f32.vlgmr.msra.gmra.mrb[38].mxu0 %vm88_vm0, %v7145_v23  ;;  %v5824_v23 = vld [vmem:[%s7931_s10 + $0x48] sm:$0xff]  ;;  %v7661_v15 = vpop.f32.mrb[37].mxu1 }
 0x42c   :  { %6486 = vmatprep.mubr.msk.f32.mxu0 %vm88_vm0, %v7602_v49  ;;  %v6806_v61 = vpack.c.bf16 %v5824_v23, %v5823_v59 }
 0x42e   :  { %6807 = vmatprep.subr.bf16.mxu0 %v6806_v61 }
 0x42f   :  { %6809 = vmatpush3.bf16.msra.mxu0 %v6806_v61 }
 0x430   :  { %6811 = vmatprep.subr.bf16.mxu0 %v6810_v4 }
 0x432   :  { %v7709_v25 = vpop.f32.mrb[38].mxu1 }
 0x433   :  { %6813 = vmatpush3.bf16.msra.mxu0 %v6810_v4  ;;  %v7713_v27 = vpop.f32.mrb[39].mxu1 }
 0x434   :  { %6500 = vmatprep.subr.mxu0 %v6965_v10 }
 0x436   :  { %6487 = vmatmul.mubr.msk.f32.vlgmr.msra.gmra.mrb[40].mxu0 %vm88_vm0, %v7649_v6 }
 0x437   :  { %6502 = vmatprep.mubr.msk.f32.mxu0 %vm6966_vm1, %v6965_v10 }
 0x4de   :  { %v7663_v16 = vpop.f32.mrb[30].mxu0 }
 0x4df   :  { %v7665_v17 = vpop.f32.mrb[31].mxu0 }
 0x4e6   :  { %v6400_v18 = vpop.f32.mrb[32].mxu0 }
 0x4e7   :  { %v2971_v19 = vpop.f32.mrb[33].mxu0 }
 0x4ee   :  { %v6422_v20 = vpop.f32.mrb[34].mxu0 }
 0x4ef   :  { %v3130_v30 = vpop.f32.mrb[35].mxu0  ;;  %6506 = vmatpush3.xpose.msk.msra.mxu1 %vm1048_vm2, %v6422_v20 }
 0x4f0   :  { %6501 = vmatpush3.xpose.msk.msra.mxu0 %vm1048_vm2, %v3130_v30  ;;  %6515 = vmatprep.subr.mxu1 %v6965_v10 }
 0x4f1   :  { %6510 = vmatprep.subr.mxu0 %v6965_v10 }
 0x4f2   :  { %6508 = vmatmul.mubr.msk.f32.vlgmr.msra.gmra.mrb[40].mxu1 %vm1048_vm2, %v6378_v54  ;;  %v5856_v54 = vld [vmem:[%s7964_s1 + $0x5] ss:$0 sm:$0xff] }
 0x4f3   :  { %6503 = vmatmul.mubr.msk.f32.vlgmr.msra.gmra.mrb[42].mxu0 %vm1048_vm2, %v2811_v55  ;;  %6516 = vmatpush3.xpose.msk.msra.mxu1 %vm1048_vm2, %v6433_v8  ;;  %v5855_v55 = vld [vmem:[%s7964_s1 + $0x4] ss:$0 sm:$0xff] }
 0x4f4   :  { %6511 = vmatpush3.xpose.msk.msra.mxu0 %vm1048_vm2, %v3210_v9  ;;  %6517 = vmatprep.mubr.msk.f32.mxu1 %vm6966_vm1, %v6965_v10 }
 0x4f5   :  { %6512 = vmatprep.mubr.msk.f32.mxu0 %vm6966_vm1, %v6965_v10  ;;  %6525 = vmatprep.subr.mxu1 %v6965_v10 }
 0x4f6   :  { %v6444_v21 = vpop.f32.mrb[36].mxu0  ;;  %6518 = vmatmul.mubr.msk.f32.vlgmr.msra.gmra.mrb[42].mxu1 %vm1048_vm2, %v6389_v63  ;;  %6520 = vmatprep.subr.mxu0 %v6965_v10 }
 0x4f7   :  { %v3290_v22 = vpop.f32.mrb[37].mxu0  ;;  %6513 = vmatmul.mubr.msk.f32.vlgmr.msra.gmra.mrb[44].mxu0 %vm1048_vm2, %v2891_v1  ;;  %6526 = vmatpush3.xpose.msk.msra.mxu1 %vm1048_vm2, %v6444_v21  ;;  %v5858_v1 = vld [vmem:[%s7964_s1 + $0x7] ss:$0 sm:$0xff] }
 0x4f8   :  { %6521 = vmatpush3.xpose.msk.msra.mxu0 %vm1048_vm2, %v3290_v22  ;;  %6527 = vmatprep.mubr.msk.f32.mxu1 %vm6966_vm1, %v6965_v10 }
 0x4f9   :  { %6522 = vmatprep.mubr.msk.f32.mxu0 %vm6966_vm1, %v6965_v10  ;;  %6535 = vmatprep.subr.mxu1 %v6965_v10 }
 0x4fa   :  { %6528 = vmatmul.mubr.msk.f32.vlgmr.msra.gmra.mrb[44].mxu1 %vm1048_vm2, %v6400_v18  ;;  %6530 = vmatprep.subr.mxu0 %v6965_v10 }
 0x4fb   :  { %6523 = vmatmul.mubr.msk.f32.vlgmr.msra.gmra.mrb[46].mxu0 %vm1048_vm2, %v2971_v19  ;;  %6536 = vmatpush3.xpose.msk.msra.mxu1 %vm1048_vm2, %v6455_v12 }
 0x4fc   :  { %6531 = vmatpush3.xpose.msk.msra.mxu0 %vm1048_vm2, %v3370_v13  ;;  %6537 = vmatprep.mubr.msk.f32.mxu1 %vm6966_vm1, %v6965_v10 }
 0x4fd   :  { %6532 = vmatprep.mubr.msk.f32.mxu0 %vm6966_vm1, %v6965_v10  ;;  %6540 = vmatprep.subr.mxu0 %v6965_v10 }
 0x4fe   :  { %6538 = vmatmul.mubr.msk.f32.vlgmr.msra.gmra.mrb[46].mxu1 %vm1048_vm2, %v6411_v5  ;;  %v6466_v24 = vpop.f32.mrb[38].mxu0  ;;  %6545 = vmatprep.subr.mxu1 %v6965_v10 }
 0x4ff   :  { %6533 = vmatmul.mubr.msk.f32.vlgmr.msra.gmra.mrb[48].mxu0 %vm1048_vm2, %v3051_v7  ;;  %v3449_v29 = vpop.f32.mrb[39].mxu0  ;;  %6546 = vmatpush3.msra.mxu1 %v6466_v24 }
 0x500   :  { %6541 = vmatpush3.msra.mxu0 %v3449_v29  ;;  %6547 = vmatprep.mubr.msk.f32.mxu1 %vm6966_vm1, %v6965_v10 }
 0x501   :  { %6555 = vmatprep.subr.mxu1 %v6965_v10  ;;  %6542 = vmatprep.mubr.msk.f32.mxu0 %vm6966_vm1, %v6965_v10 }
 0x502   :  { %6550 = vmatprep.subr.mxu0 %v6965_v10 }
 0x509   :  { %v7711_v26 = vpop.f32.mrb[40].mxu0 }
 0x50a   :  { %v7715_v35 = vpop.f32.mrb[41].mxu0 }
 0x5c5   :  { %v3846_v28 = vpop.f32.mrb[40].mxu1 }
 0x5c6   :  { %v4307_v36 = vmul.f32 0.35355338, %v3846_v28  ;;  %v3770_v31 = vpop.f32.mrb[42].mxu0  ;;  %v6509_v34 = vpop.f32.mrb[41].mxu1 }
 0x5c7   :  { %v4306_v37 = vmul.f32 0.35355338, %v3770_v31  ;;  %v6504_v38 = vpop.f32.mrb[43].mxu0 }
 0x5c8   :  { %v4363_v39 = vadd.f32 %v5852_v33, %v4307_v36 }
 0x5c9   :  { %v3998_v40 = vpop.f32.mrb[42].mxu1  ;;  %v4362_v42 = vadd.f32 %v5851_v32, %v4306_v37 }
 0x5ca   :  { %v4309_v45 = vmul.f32 0.35355338, %v3998_v40  ;;  %v3922_v47 = vpop.f32.mrb[44].mxu0  ;;  %v6519_v48 = vpop.f32.mrb[43].mxu1  ;;  %v4373_v43 = vsel %vm1048_vm2, %v4363_v39, -inf }
 0x5cb   :  { %v4308_v46 = vmul.f32 0.35355338, %v3922_v47  ;;  %v6514_v11 = vpop.f32.mrb[45].mxu0  ;;  %4374 = vmax.xlane.f32.xlu1 %v4373_v43  ;;  %v4370_v50 = vsel %vm1048_vm2, %v4362_v42, -inf }
 0x5cc   :  { %4371 = vmax.xlane.f32.xlu0 %v4370_v50  ;;  %v4365_v51 = vadd.f32 %v5854_v44, %v4309_v45 }
 0x5cd   :  { %v4150_v52 = vpop.f32.mrb[44].mxu1  ;;  %v4364_v53 = vadd.f32 %v5853_v41, %v4308_v46 }
 0x5ce   :  { %v4311_v56 = vmul.f32 0.35355338, %v4150_v52  ;;  %v4074_v57 = vpop.f32.mrb[46].mxu0  ;;  %v6529_v58 = vpop.f32.mrb[45].mxu1  ;;  %v4379_v59 = vsel %vm1048_vm2, %v4365_v51, -inf }
 0x5cf   :  { %v4310_v23 = vmul.f32 0.35355338, %v4074_v57  ;;  %v6524_v60 = vpop.f32.mrb[47].mxu0  ;;  %4380 = vmax.xlane.f32.xlu1 %v4379_v59  ;;  %v4376_v61 = vsel %vm1048_vm2, %v4364_v53, -inf }
 0x5d0   :  { %4377 = vmax.xlane.f32.xlu0 %v4376_v61  ;;  %v4367_v62 = vadd.f32 %v5856_v54, %v4311_v56 }
 0x5d1   :  { %v4302_v63 = vpop.f32.mrb[46].mxu1  ;;  %v4366_v0 = vadd.f32 %v5855_v55, %v4310_v23 }
 0x5d2   :  { %v4313_v3 = vmul.f32 0.35355338, %v4302_v63  ;;  %v4226_v4 = vpop.f32.mrb[48].mxu0  ;;  %v6539_v5 = vpop.f32.mrb[47].mxu1  ;;  %v4385_v7 = vsel %vm1048_vm2, %v4367_v62, -inf  ;;  %v2681_v63 = vadd.f32 %v7649_v6, %v7663_v16 }
 0x5d3   :  { %v4312_v8 = vmul.f32 0.35355338, %v4226_v4  ;;  %v6534_v9 = vpop.f32.mrb[49].mxu0  ;;  %4386 = vmax.xlane.f32.xlu1 %v4385_v7  ;;  %v4382_v12 = vsel %vm1048_vm2, %v4366_v0, -inf }
 0x5d4   :  { %4383 = vmax.xlane.f32.xlu0 %v4382_v12  ;;  %v4369_v13 = vadd.f32 %v5858_v1, %v4313_v3  ;;  %v2680_v1 = vadd.f32 %v7602_v49, %v7665_v17  ;;  %v2687_v3 = vsel %vm88_vm0, %v2681_v63, 0.0 }
 0x5d5   :  { %v4368_v18 = vadd.f32 %v5857_v2, %v4312_v8 }
 0x5d6   :  { %v4391_v19 = vsel %vm1048_vm2, %v4369_v13, -inf  ;;  %v2684_v4 = vsel %vm88_vm0, %v2680_v1, 0.0 }
 0x5d7   :  { %4392 = vmax.xlane.f32.xlu1 %v4391_v19  ;;  %v4388_v20 = vsel %vm1048_vm2, %v4368_v18, -inf }
 0x5d8   :  { %4389 = vmax.xlane.f32.xlu0 %v4388_v20 }
 0x658   :  { %v4375_v30 = vpop.xlane.xlu1 %4374 }
 0x659   :  { %v4395_v21 = vsub.f32 %v4363_v39, %v4375_v30  ;;  %v4372_v22 = vpop.xlane.xlu0 %4371 }
 0x65a   :  { %v4394_v24 = vsub.f32 %v4362_v42, %v4372_v22 }
 0x65b   :  { %v4404_v29 = vmul.f32 1.442695, %v4395_v21 }
 0x65c   :  { %v4402_v28 = vmul.f32 1.442695, %v4394_v24  ;;  %v4381_v33 = vpop.xlane.xlu1 %4380 }
 0x65d   :  { %6895 = vpow2.f32 %v4404_v29  ;;  %v4397_v36 = vsub.f32 %v4365_v51, %v4381_v33  ;;  %v4378_v31 = vpop.xlane.xlu0 %4377 }
 0x65e   :  { %6897 = vpow2.f32 %v4402_v28  ;;  %v4396_v34 = vsub.f32 %v4364_v53, %v4378_v31 }
 0x65f   :  { %v4408_v32 = vmul.f32 1.442695, %v4397_v36 }
 0x660   :  { %v4406_v37 = vmul.f32 1.442695, %v4396_v34  ;;  %v4387_v38 = vpop.xlane.xlu1 %4386 }
 0x661   :  { %6899 = vpow2.f32 %v4408_v32  ;;  %v4399_v40 = vsub.f32 %v4367_v62, %v4387_v38  ;;  %v4384_v44 = vpop.xlane.xlu0 %4383 }
 0x662   :  { %6901 = vpow2.f32 %v4406_v37  ;;  %v4398_v41 = vsub.f32 %v4366_v0, %v4384_v44 }
 0x663   :  { %v4412_v45 = vmul.f32 1.442695, %v4399_v40 }
 0x664   :  { %v4410_v39 = vmul.f32 1.442695, %v4398_v41  ;;  %v4393_v47 = vpop.xlane.xlu1 %4392 }
 0x665   :  { %6903 = vpow2.f32 %v4412_v45  ;;  %v4401_v42 = vsub.f32 %v4369_v13, %v4393_v47  ;;  %v4390_v48 = vpop.xlane.xlu0 %4389 }
 0x666   :  { %6905 = vpow2.f32 %v4410_v39  ;;  %v4400_v43 = vsub.f32 %v4368_v18, %v4390_v48 }
 0x667   :  { %v6896_v46 = vpop.eup %6895  ;;  %v4416_v11 = vmul.f32 1.442695, %v4401_v42 }
 0x668   :  { %v6898_v50 = vpop.eup %6897  ;;  %v4414_v51 = vmul.f32 1.442695, %v4400_v43  ;;  %v4421_v52 = vsel %vm1048_vm2, %v6896_v46, 0.0 }
 0x669   :  { %6907 = vpow2.f32 %v4416_v11  ;;  %4422 = vadd.xlane.f32.xlu1 %v4421_v52  ;;  %v4418_v53 = vsel %vm1048_vm2, %v6898_v50, 0.0 }
 0x66a   :  { %6909 = vpow2.f32 %v4414_v51  ;;  %4419 = vadd.xlane.f32.xlu0 %v4418_v53 }
 0x66b   :  { %v6900_v54 = vpop.eup %6899 }
 0x66c   :  { %v6902_v55 = vpop.eup %6901  ;;  %v4427_v56 = vsel %vm1048_vm2, %v6900_v54, 0.0 }
 0x66d   :  { %4428 = vadd.xlane.f32.xlu1 %v4427_v56  ;;  %v4424_v57 = vsel %vm1048_vm2, %v6902_v55, 0.0 }
 0x66e   :  { %4425 = vadd.xlane.f32.xlu0 %v4424_v57 }
 0x66f   :  { %v6904_v58 = vpop.eup %6903 }
 0x670   :  { %v7753_v59 = vpop.eup %6905  ;;  %v4433_v23 = vsel %vm1048_vm2, %v6904_v58, 0.0 }
 0x671   :  { %4434 = vadd.xlane.f32.xlu1 %v4433_v23  ;;  %v4430_v60 = vsel %vm1048_vm2, %v7753_v59, 0.0 }
 0x672   :  { %4431 = vadd.xlane.f32.xlu0 %v4430_v60 }
 0x673   :  { %v7758_v61 = vpop.eup %6907 }
 0x674   :  { %v7760_v62 = vpop.eup %6909  ;;  %v4439_v0 = vsel %vm1048_vm2, %v7758_v61, 0.0 }
 0x675   :  { %4440 = vadd.xlane.f32.xlu1 %v4439_v0  ;;  %v4436_v2 = vsel %vm1048_vm2, %v7760_v62, 0.0 }
 0x676   :  { %4437 = vadd.xlane.f32.xlu0 %v4436_v2 }
 0x679   :  { %2688 = vadd.xlane.f32.xlu1 %v2687_v3 }
 0x67a   :  { %2685 = vadd.xlane.f32.xlu0 %v2684_v4  ;;  %v5773_v4 = vld [vmem:[%s7933_s12] ss:$0 sm:$0xff] }
 0x6f6   :  { %v4423_v5 = vpop.xlane.xlu1 %4422 }
 0x6f7   :  { %6911 = vrcp.f32 %v4423_v5  ;;  %v4420_v6 = vpop.xlane.xlu0 %4419 }
 0x6f8   :  { %6913 = vrcp.f32 %v4420_v6 }
 0x6fa   :  { %v4429_v16 = vpop.xlane.xlu1 %4428 }
 0x6fb   :  { %6915 = vrcp.f32 %v4429_v16  ;;  %v4426_v7 = vpop.xlane.xlu0 %4425  ;;  %v5774_v16 = vld [vmem:[%s7934_s13] ss:$0 sm:$0xff] }
 0x6fc   :  { %6917 = vrcp.f32 %v4426_v7 }
 0x6fe   :  { %v4435_v49 = vpop.xlane.xlu1 %4434 }
 0x6ff   :  { %6919 = vrcp.f32 %v4435_v49  ;;  %v4432_v17 = vpop.xlane.xlu0 %4431 }
 0x700   :  { %6921 = vrcp.f32 %v4432_v17 }
 0x701   :  { %v6912_v8 = vpop.eup %6911 }
 0x702   :  { %v6914_v9 = vpop.eup %6913  ;;  %v4451_v12 = vmul.f32 %v6912_v8, %v6896_v46  ;;  %v4441_v13 = vpop.xlane.xlu1 %4440 }
 0x703   :  { %v4450_v18 = vmul.f32 %v6914_v9, %v6898_v50  ;;  %6923 = vrcp.f32 %v4441_v13  ;;  %v4438_v19 = vpop.xlane.xlu0 %4437  ;;  %v5872_v50 = vld [vmem:[%s7932_s11 + $0x10] sm:$0xff] }
 0x704   :  { %6925 = vrcp.f32 %v4438_v19  ;;  %6548 = vmatmul.mubr.msk.f32.vlgmr.msra.gmra.mrb[48].mxu1 %vm1048_vm2, %v4451_v12 }
 0x705   :  { %v6916_v20 = vpop.eup %6915  ;;  %6556 = vmatpush3.msra.mxu1 %v7659_v14  ;;  %6543 = vmatmul.mubr.msk.f32.vlgmr.msra.gmra.mrb[50].mxu0 %vm1048_vm2, %v4450_v18 }
 0x706   :  { %v6918_v30 = vpop.eup %6917  ;;  %v4453_v21 = vmul.f32 %v6916_v20, %v6900_v54  ;;  %6551 = vmatpush3.msra.mxu0 %v7661_v15  ;;  %v2689_v22 = vpop.xlane.xlu1 %2688  ;;  %6557 = vmatprep.mubr.msk.f32.mxu1 %vm6966_vm1, %v6965_v10 }
 0x707   :  { %v4452_v24 = vmul.f32 %v6918_v30, %v6902_v55  ;;  %v2692_v29 = vmul.f32 0.03125, %v2689_v22  ;;  %v2686_v28 = vpop.xlane.xlu0 %2685  ;;  %6565 = vmatprep.subr.mxu1 %v6965_v10  ;;  %6552 = vmatprep.mubr.msk.f32.mxu0 %vm6966_vm1, %v6965_v10 }
 0x708   :  { %v2691_v33 = vmul.f32 0.03125, %v2686_v28  ;;  %6558 = vmatmul.mubr.msk.f32.vlgmr.msra.gmra.mrb[50].mxu1 %vm1048_vm2, %v4453_v21  ;;  %6560 = vmatprep.subr.mxu0 %v6965_v10 }
 0x709   :  { %v6920_v14 = vpop.eup %6919  ;;  %v7783_v36 = vsub.f32 %v2681_v63, %v2692_v29  ;;  %6566 = vmatpush3.msra.mxu1 %v7711_v26  ;;  %6553 = vmatmul.mubr.msk.f32.vlgmr.msra.gmra.mrb[52].mxu0 %vm1048_vm2, %v4452_v24 }
 0x70a   :  { %v6922_v15 = vpop.eup %6921  ;;  %v4455_v31 = vmul.f32 %v6920_v14, %v6904_v58  ;;  %v7787_v34 = vsub.f32 %v2680_v1, %v2691_v33  ;;  %6561 = vmatpush3.msra.mxu0 %v7715_v35  ;;  %6567 = vmatprep.mubr.msk.f32.mxu1 %vm6966_vm1, %v6965_v10 }
 0x70b   :  { %v4454_v32 = vmul.f32 %v6922_v15, %v7753_v59  ;;  %6575 = vmatprep.subr.mxu1 %v6965_v10  ;;  %6562 = vmatprep.mubr.msk.f32.mxu0 %vm6966_vm1, %v6965_v10  ;;  %v2696_v26 = vmul.f32 %v7783_v36, %v7783_v36  ;;  %v5875_v59 = vld [vmem:[%s7932_s11 + $0x18] sm:$0xff]  ;;  %v5423_v15 = vld [vmem:[%s7939_s18] sm:$0xff] }
 0x70c   :  { %6568 = vmatmul.mubr.msk.f32.vlgmr.msra.gmra.mrb[52].mxu1 %vm1048_vm2, %v4455_v31  ;;  %6570 = vmatprep.subr.mxu0 %v6965_v10  ;;  %v2695_v35 = vmul.f32 %v7787_v34, %v7787_v34  ;;  %v5424_v31 = vld [vmem:[%s7939_s18 + $0x8] sm:$0xff] }
 0x70d   :  { %v6924_v37 = vpop.eup %6923  ;;  %6576 = vmatpush3.msra.mxu1 %v7709_v25  ;;  %6563 = vmatmul.mubr.msk.f32.vlgmr.msra.gmra.mrb[54].mxu0 %vm1048_vm2, %v4454_v32  ;;  %v2700_v38 = vsel %vm88_vm0, %v2696_v26, 0.0  ;;  %v5867_v25 = vld [vmem:[%s7932_s11 + $0x8] sm:$0xff]  ;;  %v5425_v32 = vld [vmem:[%s7939_s18 + $0x10] sm:$0xff]  ;;  %v5426_v26 = vld [vmem:[%s7939_s18 + $0x18] sm:$0xff] }
 0x70e   :  { %v6926_v40 = vpop.eup %6925  ;;  %v4457_v44 = vmul.f32 %v6924_v37, %v7758_v61  ;;  %6571 = vmatpush3.msra.mxu0 %v7713_v27  ;;  %2701 = vadd.xlane.f32.xlu1 %v2700_v38  ;;  %v2697_v41 = vsel %vm88_vm0, %v2695_v35, 0.0  ;;  %v5042_v27 = vld [vmem:[%s7932_s11] sm:$0xff]  ;;  %v6826_v35 = vpack.c.bf16 %v5426_v26, %v5425_v32  ;;  %v5518_v38 = vld [vmem:[%s7941_s20 + $0x8] sm:$0xff] }
 0x70f   :  { %v4456_v45 = vmul.f32 %v6926_v40, %v7760_v62  ;;  %2698 = vadd.xlane.f32.xlu0 %v2697_v41  ;;  %6577 = vmatprep.mubr.msk.f32.mxu1 %vm6966_vm1, %v6965_v10  ;;  %v5517_v37 = vld [vmem:[%s7941_s20] sm:$0xff] }
 0x710   :  { %6572 = vmatprep.mubr.msk.f32.mxu0 %vm6966_vm1, %v6965_v10  ;;  %6578 = vmatmul.mubr.msk.f32.vlgmr.msra.gmra.mrb[54].mxu1 %vm1048_vm2, %v4457_v44  ;;  %v6830_v40 = vpack.c.bf16 %v5518_v38, %v5517_v37  ;;  %v5886_v32 = vld [vmem:[%s7937_s16] ss:$0 sm:$0xff] }
 0x711   :  { %6573 = vmatmul.mubr.msk.f32.vlgmr.msra.gmra.mrb[56].mxu0 %vm1048_vm2, %v4456_v45  ;;  %6580 = vmatprep.subr.mxu0 %v5867_v25  ;;  %v5887_v38 = vld [vmem:[%s7938_s17] ss:$0 sm:$0xff] }
 0x712   :  { %6581 = vmatpush3.msra.mxu0 %v5867_v25 }
 0x713   :  { %6585 = vmatprep.subr.mxu0 %v5042_v27 }
 0x79b   :  { %v2702_v23 = vpop.xlane.xlu1 %2701 }
 0x79c   :  { %v2699_v60 = vpop.xlane.xlu0 %2698  ;;  %v2704_v61 = vmul.f32 0.03125, %v2702_v23  ;;  %v5524_v23 = vld [vmem:[%s7941_s20 + $0x38] sm:$0xff] }
 0x79d   :  { %v2703_v62 = vmul.f32 0.03125, %v2699_v60 }
 0x79e   :  { %v2706_v63 = vadd.f32 1e-05, %v2704_v61  ;;  %v5880_v61 = vld [vmem:[%s7940_s19] ss:$0 sm:$0xff] }
 0x79f   :  { %v2705_v0 = vadd.f32 1e-05, %v2703_v62 }
 0x7a0   :  { %6927 = vrsqrt.f32 %v2706_v63 }
 0x7a1   :  { %6929 = vrsqrt.f32 %v2705_v0 }
 0x7aa   :  { %v6928_v1 = vpop.eup %6927 }
 0x7ab   :  { %v6930_v2 = vpop.eup %6929  ;;  %v2710_v3 = vmul.f32 %v6928_v1, %v7783_v36 }
 0x7ac   :  { %v2709_v5 = vmul.f32 %v6930_v2, %v7787_v34  ;;  %v6822_v34 = vpack.c.bf16 %v5424_v31, %v5423_v15 }
 0x7ad   :  { %v2718_v6 = vmul.f32 %v5773_v4, %v2710_v3 }
 0x7ae   :  { %v2717_v7 = vmul.f32 %v5773_v4, %v2709_v5  ;;  %6823 = vmatprep.subr.bf16.mxu1 %v6822_v34  ;;  %v5883_v4 = vld [vmem:[%s7942_s21] ss:$0 sm:$0xff] }
 0x7af   :  { %v2726_v49 = vadd.f32 %v5774_v16, %v2718_v6  ;;  %6825 = vmatpush3.bf16.msra.mxu1 %v6822_v34 }
 0x7b0   :  { %v2725_v8 = vadd.f32 %v5774_v16, %v2717_v7  ;;  %6827 = vmatprep.subr.bf16.mxu1 %v6826_v35 }
 0x7b3   :  { %6829 = vmatpush3.bf16.msra.mxu1 %v6826_v35 }
 0x7b4   :  { %6831 = vmatprep.subr.bf16.mxu1 %v6830_v40 }
 0x7d7   :  { %v4600_v39 = vpop.f32.mrb[48].mxu1 }
 0x7d8   :  { %v4527_v47 = vpop.f32.mrb[50].mxu0  ;;  %v6549_v42 = vpop.f32.mrb[49].mxu1 }
 0x7d9   :  { %v6544_v48 = vpop.f32.mrb[51].mxu0  ;;  %v5878_v42 = vld [vmem:[%s7935_s14] ss:$0 sm:$0xff] }
 0x7db   :  { %v4746_v10 = vpop.f32.mrb[50].mxu1 }
 0x7dc   :  { %v4673_v43 = vpop.f32.mrb[52].mxu0  ;;  %v6559_v46 = vpop.f32.mrb[51].mxu1 }
 0x7dd   :  { %v6554_v11 = vpop.f32.mrb[53].mxu0  ;;  %6582 = vmatprep.mubr.msk.f32.mxu0 %vm1048_vm2, %v4673_v43  ;;  %v5879_v46 = vld [vmem:[%s7936_s15] ss:$0 sm:$0xff] }
 0x7de   :  { %6583 = vmatmul.mubr.msk.f32.vlgmr.msra.gmra.mrb[58].mxu0 %vm1048_vm2, %v4746_v10 }
 0x7df   :  { %v4892_v51 = vpop.f32.mrb[52].mxu1  ;;  %6586 = vmatpush3.msra.mxu0 %v5042_v27  ;;  %6587 = vmatprep.mubr.msk.f32.mxu0 %vm1048_vm2, %v4527_v47 }
 0x7e0   :  { %v4819_v52 = vpop.f32.mrb[54].mxu0  ;;  %v6569_v53 = vpop.f32.mrb[53].mxu1  ;;  %6590 = vmatprep.subr.mxu0 %v5872_v50 }
 0x7e1   :  { %v6564_v54 = vpop.f32.mrb[55].mxu0 }
 0x7e3   :  { %v5038_v55 = vpop.f32.mrb[54].mxu1 }
 0x7e4   :  { %v4965_v56 = vpop.f32.mrb[56].mxu0  ;;  %v6579_v57 = vpop.f32.mrb[55].mxu1 }
 0x7e5   :  { %v6574_v58 = vpop.f32.mrb[57].mxu0  ;;  %v5522_v57 = vld [vmem:[%s7941_s20 + $0x28] sm:$0xff] }
 0x7e6   :  { %6588 = vmatmul.mubr.msk.f32.vlgmr.msra.gmra.mrb[58].mxu0 %vm1048_vm2, %v4600_v39 }
 0x7e7   :  { %6591 = vmatpush3.msra.mxu0 %v5872_v50  ;;  %6592 = vmatprep.mubr.msk.f32.mxu0 %vm1048_vm2, %v4819_v52  ;;  %v5520_v52 = vld [vmem:[%s7941_s20 + $0x18] sm:$0xff] }
 0x7e8   :  { %6595 = vmatprep.subr.mxu0 %v5875_v59 }
 0x7ee   :  { %6593 = vmatmul.mubr.msk.f32.vlgmr.msra.gmra.mrb[58].mxu0 %vm1048_vm2, %v4892_v51  ;;  %v5519_v51 = vld [vmem:[%s7941_s20 + $0x10] sm:$0xff] }
 0x7ef   :  { %6596 = vmatpush3.msra.mxu0 %v5875_v59  ;;  %6597 = vmatprep.mubr.msk.f32.mxu0 %vm1048_vm2, %v4965_v56  ;;  %v5521_v56 = vld [vmem:[%s7941_s20 + $0x20] sm:$0xff]  ;;  %v5523_v59 = vld [vmem:[%s7941_s20 + $0x30] sm:$0xff] }
 0x7f0   :  { %v6838_v58 = vpack.c.bf16 %v5522_v57, %v5521_v56  ;;  %v6842_v60 = vpack.c.bf16 %v5524_v23, %v5523_v59 }
 0x7f6   :  { %6598 = vmatmul.mubr.msk.f32.vlgmr.msra.gmra.mrb[58].mxu0 %vm1048_vm2, %v5038_v55  ;;  %v6834_v55 = vpack.c.bf16 %v5520_v52, %v5519_v51 }
 0x8c9   :  { %v6599_v17 = vpop.f32.mrb[58].mxu0 }
 0x8ca   :  { %v5378_v9 = vadd.f32 %v6599_v17, %v2726_v49  ;;  %v5366_v12 = vpop.f32.mrb[59].mxu0 }
 0x8cb   :  { %v5377_v13 = vadd.f32 %v5366_v12, %v2725_v8 }
 0x8cc   :  { %v5384_v18 = vsel %vm88_vm0, %v5378_v9, 0.0 }
 0x8cd   :  { %5385 = vadd.xlane.f32.xlu1 %v5384_v18  ;;  %v5381_v19 = vsel %vm88_vm0, %v5377_v13, 0.0 }
 0x8ce   :  { %5382 = vadd.xlane.f32.xlu0 %v5381_v19 }
 0x95a   :  { %v5386_v20 = vpop.xlane.xlu1 %5385 }
 0x95b   :  { %v5388_v30 = vmul.f32 0.03125, %v5386_v20  ;;  %v5383_v21 = vpop.xlane.xlu0 %5382 }
 0x95c   :  { %v5387_v22 = vmul.f32 0.03125, %v5383_v21 }
 0x95d   :  { %v5390_v24 = vsub.f32 %v5378_v9, %v5388_v30 }
 0x95e   :  { %v5389_v29 = vsub.f32 %v5377_v13, %v5387_v22 }
 0x95f   :  { %v5392_v28 = vmul.f32 %v5390_v24, %v5390_v24 }
 0x960   :  { %v5391_v33 = vmul.f32 %v5389_v29, %v5389_v29 }
 0x961   :  { %v5396_v14 = vsel %vm88_vm0, %v5392_v28, 0.0 }
 0x962   :  { %5397 = vadd.xlane.f32.xlu1 %v5396_v14  ;;  %v5393_v36 = vsel %vm88_vm0, %v5391_v33, 0.0 }
 0x963   :  { %5394 = vadd.xlane.f32.xlu0 %v5393_v36 }
 0x9ef   :  { %v5398_v44 = vpop.xlane.xlu1 %5397 }
 0x9f0   :  { %v5400_v41 = vmul.f32 0.03125, %v5398_v44  ;;  %v5395_v45 = vpop.xlane.xlu0 %5394 }
 0x9f1   :  { %v5399_v25 = vmul.f32 0.03125, %v5395_v45 }
 0x9f2   :  { %v5402_v27 = vadd.f32 1e-05, %v5400_v41 }
 0x9f3   :  { %v5401_v39 = vadd.f32 1e-05, %v5399_v25 }
 0x9f4   :  { %6931 = vrsqrt.f32 %v5402_v27 }
 0x9f5   :  { %6933 = vrsqrt.f32 %v5401_v39 }
 0x9fe   :  { %v6932_v47 = vpop.eup %6931 }
 0x9ff   :  { %v6934_v48 = vpop.eup %6933  ;;  %v5406_v10 = vmul.f32 %v6932_v47, %v5390_v24 }
 0xa00   :  { %v5405_v43 = vmul.f32 %v6934_v48, %v5389_v29 }
 0xa01   :  { %v5414_v11 = vmul.f32 %v5878_v42, %v5406_v10 }
 0xa02   :  { %v5413_v50 = vmul.f32 %v5878_v42, %v5405_v43 }
 0xa03   :  { %v5422_v54 = vadd.f32 %v5879_v46, %v5414_v11 }
 0xa04   :  { %v5421_v53 = vadd.f32 %v5879_v46, %v5413_v50 }
 0xa06   :  { %6608 = vmatprep.mubr.msk.f32.mxu1 %vm88_vm0, %v5421_v53 }
 0xa07   :  { %6609 = vmatmul.mubr.msk.f32.vlgmr.msra.gmra.mrb[56].mxu1 %vm88_vm0, %v5422_v54 }
 0xa08   :  { %6833 = vmatpush3.bf16.msra.mxu1 %v6830_v40 }
 0xa09   :  { %6835 = vmatprep.subr.bf16.mxu1 %v6834_v55 }
 0xa0c   :  { %6837 = vmatpush3.bf16.msra.mxu1 %v6834_v55 }
 0xa0d   :  { %6839 = vmatprep.subr.bf16.mxu1 %v6838_v58 }
 0xa10   :  { %6841 = vmatpush3.bf16.msra.mxu1 %v6838_v58 }
 0xa11   :  { %6843 = vmatprep.subr.bf16.mxu1 %v6842_v60 }
 0xa14   :  { %6845 = vmatpush3.bf16.msra.mxu1 %v6842_v60 }
 0xada   :  { %v6610_v62 = vpop.f32.mrb[56].mxu1 }
 0xadb   :  { %v5512_v63 = vadd.f32 %v6610_v62, %v5880_v61  ;;  %v5506_v0 = vpop.f32.mrb[57].mxu1 }
 0xadc   :  { %v5507_v1 = vadd.f32 %v5880_v61, %v5506_v0 }
 0xadd   :  { %v5516_v3 = vmax.f32 %v5512_v63, 0.0 }
 0xade   :  { %v5515_v2 = vmax.f32 %v5507_v1, 0.0 }
 0xae0   :  { %6627 = vmatprep.mubr.msk.f32.mxu1 %vm5532_vm3, %v5515_v2 }
 0xae1   :  { %6628 = vmatmul.mubr.msk.f32.vlgmr.msra.gmra.mrb[58].mxu1 %vm5532_vm3, %v5516_v3 }
 0xbb4   :  { %v6629_v5 = vpop.f32.mrb[58].mxu1 }
 0xbb5   :  { %v5611_v6 = vadd.f32 %v6629_v5, %v5883_v4  ;;  %v5605_v16 = vpop.f32.mrb[59].mxu1 }
 0xbb6   :  { %v5606_v7 = vadd.f32 %v5883_v4, %v5605_v16 }
 0xbb7   :  { %v5615_v49 = vadd.f32 %v5611_v6, %v5422_v54 }
 0xbb8   :  { %v5614_v17 = vadd.f32 %v5606_v7, %v5421_v53 }
 0xbb9   :  { %v5621_v8 = vsel %vm88_vm0, %v5615_v49, 0.0 }
 0xbba   :  { %5622 = vadd.xlane.f32.xlu1 %v5621_v8  ;;  %v5618_v9 = vsel %vm88_vm0, %v5614_v17, 0.0 }
 0xbbb   :  { %5619 = vadd.xlane.f32.xlu0 %v5618_v9 }
 0xc47   :  { %v5623_v12 = vpop.xlane.xlu1 %5622 }
 0xc48   :  { %v5625_v13 = vmul.f32 0.03125, %v5623_v12  ;;  %v5620_v18 = vpop.xlane.xlu0 %5619 }
 0xc49   :  { %v5624_v19 = vmul.f32 0.03125, %v5620_v18 }
 0xc4a   :  { %v5627_v20 = vsub.f32 %v5615_v49, %v5625_v13 }
 0xc4b   :  { %v5626_v30 = vsub.f32 %v5614_v17, %v5624_v19 }
 0xc4c   :  { %v5629_v21 = vmul.f32 %v5627_v20, %v5627_v20 }
 0xc4d   :  { %v5628_v22 = vmul.f32 %v5626_v30, %v5626_v30 }
 0xc4e   :  { %v5633_v24 = vsel %vm88_vm0, %v5629_v21, 0.0 }
 0xc4f   :  { %5634 = vadd.xlane.f32.xlu1 %v5633_v24  ;;  %v5630_v29 = vsel %vm88_vm0, %v5628_v22, 0.0 }
 0xc50   :  { %5631 = vadd.xlane.f32.xlu0 %v5630_v29 }
 0xcdc   :  { %v5635_v28 = vpop.xlane.xlu1 %5634 }
 0xcdd   :  { %v5637_v33 = vmul.f32 0.03125, %v5635_v28  ;;  %v5632_v14 = vpop.xlane.xlu0 %5631 }
 0xcde   :  { %v5636_v36 = vmul.f32 0.03125, %v5632_v14 }
 0xcdf   :  { %v5639_v15 = vadd.f32 1e-05, %v5637_v33 }
 0xce0   :  { %v5638_v31 = vadd.f32 1e-05, %v5636_v36 }
 0xce1   :  { %6935 = vrsqrt.f32 %v5639_v15 }
 0xce2   :  { %6937 = vrsqrt.f32 %v5638_v31 }
 0xceb   :  { %v6936_v34 = vpop.eup %6935 }
 0xcec   :  { %v6938_v26 = vpop.eup %6937  ;;  %v5643_v35 = vmul.f32 %v6936_v34, %v5627_v20 }
 0xced   :  { %v5642_v37 = vmul.f32 %v6938_v26, %v5626_v30 }
 0xcee   :  { %v5651_v40 = vmul.f32 %v5886_v32, %v5643_v35 }
 0xcef   :  { %v5650_v44 = vmul.f32 %v5886_v32, %v5642_v37 }
 0xcf0   :  { %v5659_v41 = vadd.f32 %v5887_v38, %v5651_v40 }
 0xcf1   :  { %v5658_v45 = vadd.f32 %v5887_v38, %v5650_v44 }
 0xcf2   :  { %5661 = vst.msk [vmem:[#allocation2 + $0x8] sm:$0xff] %vm88_vm0, %v5659_v41 }
 0xcf3   :  { %5660 = vst.msk [vmem:[#allocation2] sm:$0xff] %vm88_vm0, %v5658_v45 }
 0xcf4   :  { %6952 = shalt.err (!%p6949_p4)
}
 0xcf5   :  { %s6953_s4 = scalar_lea.hbm %s7943_s22, 256 }
 0xcf6   :  { %p6954_p5 = scmp.ne.s32.totalorder %s7943_s22, %s6953_s4  ;;  %p6957_p6 = scmp.lt.u32.totalorder %s6953_s4, %s7943_s22 }
 0xcf8   :  { %p6959_p7 = pnand %p6957_p6, %p6954_p5 }
 0xcfa   :  { %6962 = shalt.err (!%p6959_p7)
}
 0xcfb   :  { %s6968_s5 = smov 128   ;;  %s6969_s7 = smov 8  }
 0xcfc   :  { %5673 = dma.vmem_to_hbm [thread:$0]  %s5668_s28, 256, %s7943_s22, [#allocation3], %s6968_s5, %s6968_s5, %s6969_s7  }
 0xcfd   :  { %6963 = dma.done.wait [#allocation3], 256  }
 0xcfe   :  { %6964 = vsyncadd [#allocation3], 4294967040 }
 0xcff   :  { %5677 = vsyncpa [#allocation3], 1 }

</bundles_post_ra>
